<compile_context>
chip_gen: v6e
topology: v6e:2x2x1
jax: 0.10.0
libtpu: 0.0.40
codegen_flags: <defaults>
</compile_context>

<pallas_src>
import jax
import jax.numpy as jnp
from jax.experimental import pallas as pl
from jax.experimental.pallas import tpu as pltpu


# ----------------------------------------------------------------------------
# Pallas kernel: neighbor max-pool + 3x (Linear -> folded BN -> ReLU) + residual
# ----------------------------------------------------------------------------
def _invres_kernel(g_ref, x_ref,
                   w1_ref, b1_ref,
                   w2_ref, b2_ref,
                   w3_ref, b3_ref,
                   o_ref):
    # g_ref: (K, TN, Cin) bf16   x_ref: (TN, C) bf16   o_ref: (TN, C) f32
    # Unrolled K-way elementwise max (runs on the VALUs, not the XLU).
    k_nbrs = g_ref.shape[0]
    pooled = g_ref[0]
    for k in range(1, k_nbrs):
        pooled = jnp.maximum(pooled, g_ref[k])                       # (TN, Cin) bf16

    # LocalAggregation conv: bf16 operands, f32 accumulate, BN scale pre-folded.
    h = jnp.dot(pooled, w1_ref[...], preferred_element_type=jnp.float32)
    h = jnp.maximum(h + b1_ref[...], 0.0)                            # (TN, C) f32

    # pwconv[0]
    h = jnp.dot(h.astype(w2_ref.dtype), w2_ref[...],
                preferred_element_type=jnp.float32)
    h = jnp.maximum(h + b2_ref[...], 0.0)                            # (TN, mid) f32

    # pwconv[1]
    h = jnp.dot(h.astype(w3_ref.dtype), w3_ref[...],
                preferred_element_type=jnp.float32)
    h = jnp.maximum(h + b3_ref[...], 0.0)                            # (TN, C) f32

    # Residual add in f32; single cast at the store.
    o_ref[...] = (h + x_ref[...].astype(jnp.float32)).astype(o_ref.dtype)


def _choose_tn(n, k, cin, c, *, tn_max=512, min_steps=8,
               vmem_budget=32 * 1024 * 1024):
    """Pick the point tile: big enough to amortize the ~0.35us/step overhead,
    small enough that the double-buffered streamed tiles fit a VMEM budget
    sized for v7x (64 MiB physical), and keeping >= min_steps grid steps so
    both v7x TensorCores stay fed."""
    def stream_bytes(t):
        # double-buffered: grouped (bf16) + identity (bf16) + output (f32)
        return 2 * (t * k * cin * 2 + t * c * 2 + t * c * 4)

    tn = tn_max
    while tn > 64 and stream_bytes(tn) > vmem_budget:
        tn //= 2
    while tn > 64 and pl.cdiv(n, tn) < min_steps:
        tn //= 2
    return max(tn, 8)


def _invres_pallas_call(g, x, w1, b1, w2, b2, w3, b3, *,
                        n_pad, tn, k, cin, c, mid, single_buffer_params):
    if single_buffer_params:
        # Grid-invariant parameters do not need double-buffering.
        def const_spec(shape):
            return pl.BlockSpec(shape, lambda i: (0, 0),
                                pipeline_mode=pl.Buffered(1))
    else:
        def const_spec(shape):
            return pl.BlockSpec(shape, lambda i: (0, 0))

    grid_spec = pltpu.PrefetchScalarGridSpec(
        num_scalar_prefetch=0,
        grid=(n_pad // tn,),
        in_specs=[
            pl.BlockSpec((k, tn, cin), lambda i: (0, i, 0)),   # grouped (K, N, Cin)
            pl.BlockSpec((tn, c), lambda i: (i, 0)),           # identity / residual
            const_spec((cin, c)), const_spec((1, c)),          # W1 (scale folded), b1
            const_spec((c, mid)), const_spec((1, mid)),        # W2, b2
            const_spec((mid, c)), const_spec((1, c)),          # W3, b3
        ],
        out_specs=pl.BlockSpec((tn, c), lambda i: (i, 0)),
    )

    return pl.pallas_call(
        _invres_kernel,
        out_shape=jax.ShapeDtypeStruct((n_pad, c), jnp.float32),
        grid_spec=grid_spec,
        compiler_params=pltpu.CompilerParams(
            dimension_semantics=("parallel",),
            vmem_limit_bytes=48 * 1024 * 1024),
    )(g, x, w1, b1, w2, b2, w3, b3)


def invres_mlp_pallas(grouped, identity, params, *, tn=None):
    """grouped: (K, N, Cin=C+3) f32; identity: (N, C) f32; returns (N, C) f32."""
    k, n, cin = grouped.shape
    c = identity.shape[1]
    mid = params["w2"].shape[1]

    if tn is None:
        tn = _choose_tn(n, k, cin, c)
    n_pad = pl.cdiv(n, tn) * tn
    if n_pad != n:
        grouped = jnp.pad(grouped, ((0, 0), (0, n_pad - n), (0, 0)))
        identity_p = jnp.pad(identity, ((0, n_pad - n), (0, 0)))
    else:
        identity_p = identity

    # bf16 operands for the HBM-heavy streams and the MXU; biases stay f32.
    g_bf16 = grouped.astype(jnp.bfloat16)
    x_bf16 = identity_p.astype(jnp.bfloat16)
    # Fold eval-mode BN scale into the weights; pass only the bias.
    w1 = (params["w1"] * params["s1"]).astype(jnp.bfloat16)
    w2 = (params["w2"] * params["s2"]).astype(jnp.bfloat16)
    w3 = (params["w3"] * params["s3"]).astype(jnp.bfloat16)
    b1 = params["b1"].astype(jnp.float32)
    b2 = params["b2"].astype(jnp.float32)
    b3 = params["b3"].astype(jnp.float32)

    args = (g_bf16, x_bf16, w1, b1, w2, b2, w3, b3)
    kwargs = dict(n_pad=n_pad, tn=tn, k=k, cin=cin, c=c, mid=mid)
    try:
        out = _invres_pallas_call(*args, single_buffer_params=True, **kwargs)
    except Exception:
        # Defensive fallback if pipeline_mode=pl.Buffered(1) is unsupported.
        out = _invres_pallas_call(*args, single_buffer_params=False, **kwargs)

    return out[:n] if n_pad != n else out


# ----------------------------------------------------------------------------
# Glue: kNN grouper (QueryAndGroup, with_xyz=True), segment-aware via offsets o.
# Produces grouped features directly in (K, N, C+3) layout for the kernel.
# ----------------------------------------------------------------------------
def knn_group(p, x, o, k):
    """p: (N,3), x: (N,C), o: (B,) cumulative offsets -> (k, N, C+3)."""
    n = p.shape[0]
    seg = jnp.searchsorted(o, jnp.arange(n), side="right")          # batch id/point
    d2 = jnp.sum((p[:, None, :] - p[None, :, :]) ** 2, axis=-1)     # (N, N)
    d2 = jnp.where(seg[:, None] != seg[None, :], jnp.inf, d2)       # in-segment only
    idx = jnp.argsort(d2, axis=-1)[:, :k]                           # (N, k)
    idx_t = idx.T                                                   # (k, N)
    rel_xyz = p[idx_t] - p[None, :, :]                              # (k, N, 3)
    feats = x[idx_t]                                                # (k, N, C)
    return jnp.concatenate([rel_xyz, feats], axis=-1)               # (k, N, C+3)


def fold_bn(gamma, beta, mean, var, eps=1e-5):
    scale = gamma / jnp.sqrt(var + eps)
    bias = beta - mean * scale
    return scale[None, :], bias[None, :]


def make_params(key, c, expansion=4):
    """Synthetic parameters matching InvResMLP.__init__ shapes:
       LocalAggregation MLP: Linear(C+3 -> C, bias=False) + BN(C)
       pwconv[0]:            Linear(C -> mid, bias=False) + BN(mid)
       pwconv[1]:            Linear(mid -> C, bias=False) + BN(C)."""
    mid = int(c * expansion)
    ks = jax.random.split(key, 15)

    def bn(k0, k1, k2, k3, n):
        gamma = 1.0 + 0.1 * jax.random.normal(k0, (n,), jnp.float32)
        beta = 0.1 * jax.random.normal(k1, (n,), jnp.float32)
        mean = 0.1 * jax.random.normal(k2, (n,), jnp.float32)
        var = jnp.abs(1.0 + 0.1 * jax.random.normal(k3, (n,), jnp.float32))
        return fold_bn(gamma, beta, mean, var)

    w1 = jax.random.normal(ks[0], (c + 3, c), jnp.float32) * 0.1    # (in, out) layout
    w2 = jax.random.normal(ks[1], (c, mid), jnp.float32) * 0.1
    w3 = jax.random.normal(ks[2], (mid, c), jnp.float32) * 0.1
    s1, b1 = bn(ks[3], ks[4], ks[5], ks[6], c)
    s2, b2 = bn(ks[7], ks[8], ks[9], ks[10], mid)
    s3, b3 = bn(ks[11], ks[12], ks[13], ks[14], c)
    return dict(w1=w1, s1=s1, b1=b1, w2=w2, s2=s2, b2=b2, w3=w3, s3=s3, b3=b3)


def invres_mlp_forward(pxo, params, k=8):
    """Equivalent of InvResMLP.forward: returns [p, x_out, o]."""
    p, x, o = pxo
    grouped = knn_group(p, x, o, k)                  # glue (gather / kNN)
    x_out = invres_mlp_pallas(grouped, x, params)    # fused hot path
    return [p, x_out, o]


# Pure-JAX reference (compute_dtype=bfloat16 mirrors the kernel's casts;
# compute_dtype=float32 is the exact module semantics for a loose sanity check).
def _reference(p, x, o, params, k, compute_dtype=jnp.float32):
    g = knn_group(p, x, o, k).astype(compute_dtype)
    pooled = jnp.max(g, axis=0)
    w1 = (params["w1"] * params["s1"]).astype(compute_dtype)
    w2 = (params["w2"] * params["s2"]).astype(compute_dtype)
    w3 = (params["w3"] * params["s3"]).astype(compute_dtype)
    h = jnp.maximum(jnp.dot(pooled, w1, preferred_element_type=jnp.float32)
                    + params["b1"], 0.0)
    h = jnp.maximum(jnp.dot(h.astype(compute_dtype), w2,
                            preferred_element_type=jnp.float32) + params["b2"], 0.0)
    h = jnp.maximum(jnp.dot(h.astype(compute_dtype), w3,
                            preferred_element_type=jnp.float32) + params["b3"], 0.0)
    return h + x.astype(compute_dtype).astype(jnp.float32)


if __name__ == "__main__":
    key = jax.random.PRNGKey(0)
    k_p, k_x, k_w = jax.random.split(key, 3)

    N, C, K = 128, 16, 8                     # points, channels, neighbors
    expansion = 4                            # mid_channels = 64
    p = jax.random.normal(k_p, (N, 3), jnp.float32)
    x = jax.random.normal(k_x, (N, C), jnp.float32)
    o = jnp.array([64, 128], dtype=jnp.int32)   # two batch segments (cumulative)

    params = make_params(k_w, C, expansion)

    p_out, x_out, o_out = invres_mlp_forward([p, x, o], params, k=K)
    x_out = jax.block_until_ready(x_out)
    assert x_out.shape == (N, C)
    assert x_out.dtype == jnp.float32

    ref_bf16 = _reference(p, x, o, params, K, compute_dtype=jnp.bfloat16)
    ref_f32 = _reference(p, x, o, params, K, compute_dtype=jnp.float32)
    assert jnp.allclose(x_out, ref_bf16, atol=2e-3, rtol=2e-3), \
        "mismatch vs bf16 reference"
    assert jnp.allclose(x_out, ref_f32, atol=6e-2, rtol=6e-2), \
        "mismatch vs f32 reference"

    print("KERNEL_OK")
</pallas_src>

<mosaic_0001>
module attributes {stable_mosaic.version = 11 : i64} {
  func.func @_invres_kernel(%arg0: i32, %arg1: memref<8x64x19xbf16, #tpu.memory_space<vmem>>, %arg2: memref<64x16xbf16, #tpu.memory_space<vmem>>, %arg3: memref<19x16xbf16, #tpu.memory_space<vmem>>, %arg4: memref<1x16xf32, #tpu.memory_space<vmem>>, %arg5: memref<16x64xbf16, #tpu.memory_space<vmem>>, %arg6: memref<1x64xf32, #tpu.memory_space<vmem>>, %arg7: memref<64x16xbf16, #tpu.memory_space<vmem>>, %arg8: memref<1x16xf32, #tpu.memory_space<vmem>>, %arg9: memref<64x16xf32, #tpu.memory_space<vmem>>) attributes {dimension_semantics = [#tpu.dimension_semantics<parallel>], iteration_bounds = array<i64: 2>, scalar_prefetch = 0 : i64, scratch_operands = 0 : i64, tpu.core_type = #tpu.core_type<tc>, window_params = [{transform_indices = @transform_0, window_bounds = array<i64: 8, 64, 19>}, {transform_indices = @transform_1, window_bounds = array<i64: 64, 16>}, {pipeline_mode = #tpu.pipeline_mode<synchronous>, transform_indices = @transform_2, window_bounds = array<i64: 19, 16>}, {pipeline_mode = #tpu.pipeline_mode<synchronous>, transform_indices = @transform_3, window_bounds = array<i64: 1, 16>}, {pipeline_mode = #tpu.pipeline_mode<synchronous>, transform_indices = @transform_4, window_bounds = array<i64: 16, 64>}, {pipeline_mode = #tpu.pipeline_mode<synchronous>, transform_indices = @transform_5, window_bounds = array<i64: 1, 64>}, {pipeline_mode = #tpu.pipeline_mode<synchronous>, transform_indices = @transform_6, window_bounds = array<i64: 64, 16>}, {pipeline_mode = #tpu.pipeline_mode<synchronous>, transform_indices = @transform_7, window_bounds = array<i64: 1, 16>}, {transform_indices = @transform_8, window_bounds = array<i64: 64, 16>}]} {
    %c0 = arith.constant 0 : index
    %c0_0 = arith.constant 0 : index
    %c0_1 = arith.constant 0 : index
    %0 = vector.load %arg1[%c0, %c0_0, %c0_1] : memref<8x64x19xbf16, #tpu.memory_space<vmem>>, vector<1x64x19xbf16>
    %1 = vector.shape_cast %0 : vector<1x64x19xbf16> to vector<64x19xbf16>
    %c1 = arith.constant 1 : index
    %c0_2 = arith.constant 0 : index
    %c0_3 = arith.constant 0 : index
    %2 = vector.load %arg1[%c1, %c0_2, %c0_3] : memref<8x64x19xbf16, #tpu.memory_space<vmem>>, vector<1x64x19xbf16>
    %3 = vector.shape_cast %2 : vector<1x64x19xbf16> to vector<64x19xbf16>
    %4 = arith.maximumf %1, %3 : vector<64x19xbf16>
    %c2 = arith.constant 2 : index
    %c0_4 = arith.constant 0 : index
    %c0_5 = arith.constant 0 : index
    %5 = vector.load %arg1[%c2, %c0_4, %c0_5] : memref<8x64x19xbf16, #tpu.memory_space<vmem>>, vector<1x64x19xbf16>
    %6 = vector.shape_cast %5 : vector<1x64x19xbf16> to vector<64x19xbf16>
    %7 = arith.maximumf %4, %6 : vector<64x19xbf16>
    %c3 = arith.constant 3 : index
    %c0_6 = arith.constant 0 : index
    %c0_7 = arith.constant 0 : index
    %8 = vector.load %arg1[%c3, %c0_6, %c0_7] : memref<8x64x19xbf16, #tpu.memory_space<vmem>>, vector<1x64x19xbf16>
    %9 = vector.shape_cast %8 : vector<1x64x19xbf16> to vector<64x19xbf16>
    %10 = arith.maximumf %7, %9 : vector<64x19xbf16>
    %c4 = arith.constant 4 : index
    %c0_8 = arith.constant 0 : index
    %c0_9 = arith.constant 0 : index
    %11 = vector.load %arg1[%c4, %c0_8, %c0_9] : memref<8x64x19xbf16, #tpu.memory_space<vmem>>, vector<1x64x19xbf16>
    %12 = vector.shape_cast %11 : vector<1x64x19xbf16> to vector<64x19xbf16>
    %13 = arith.maximumf %10, %12 : vector<64x19xbf16>
    %c5 = arith.constant 5 : index
    %c0_10 = arith.constant 0 : index
    %c0_11 = arith.constant 0 : index
    %14 = vector.load %arg1[%c5, %c0_10, %c0_11] : memref<8x64x19xbf16, #tpu.memory_space<vmem>>, vector<1x64x19xbf16>
    %15 = vector.shape_cast %14 : vector<1x64x19xbf16> to vector<64x19xbf16>
    %16 = arith.maximumf %13, %15 : vector<64x19xbf16>
    %c6 = arith.constant 6 : index
    %c0_12 = arith.constant 0 : index
    %c0_13 = arith.constant 0 : index
    %17 = vector.load %arg1[%c6, %c0_12, %c0_13] : memref<8x64x19xbf16, #tpu.memory_space<vmem>>, vector<1x64x19xbf16>
    %18 = vector.shape_cast %17 : vector<1x64x19xbf16> to vector<64x19xbf16>
    %19 = arith.maximumf %16, %18 : vector<64x19xbf16>
    %c7 = arith.constant 7 : index
    %c0_14 = arith.constant 0 : index
    %c0_15 = arith.constant 0 : index
    %20 = vector.load %arg1[%c7, %c0_14, %c0_15] : memref<8x64x19xbf16, #tpu.memory_space<vmem>>, vector<1x64x19xbf16>
    %21 = vector.shape_cast %20 : vector<1x64x19xbf16> to vector<64x19xbf16>
    %22 = arith.maximumf %19, %21 : vector<64x19xbf16>
    %c0_16 = arith.constant 0 : index
    %c0_17 = arith.constant 0 : index
    %23 = vector.load %arg3[%c0_16, %c0_17] : memref<19x16xbf16, #tpu.memory_space<vmem>>, vector<19x16xbf16>
    %cst = arith.constant dense<0.000000e+00> : vector<64x16xf32>
    %24 = tpu.matmul %22, %23, %cst {dimension_numbers = #tpu.dot_dimension_numbers<[1], [0], [0], [1], [0, 0, 1, 1], [], []>} : vector<64x19xbf16>, vector<19x16xbf16>, vector<64x16xf32> -> vector<64x16xf32>
    %c0_18 = arith.constant 0 : index
    %c0_19 = arith.constant 0 : index
    %25 = vector.load %arg4[%c0_18, %c0_19] : memref<1x16xf32, #tpu.memory_space<vmem>>, vector<1x16xf32>
    %26 = vector.broadcast %25 : vector<1x16xf32> to vector<64x16xf32>
    %27 = arith.addf %24, %26 : vector<64x16xf32>
    %cst_20 = arith.constant 0.000000e+00 : f32
    %28 = vector.broadcast %cst_20 : f32 to vector<64x16xf32>
    %29 = arith.maximumf %27, %28 : vector<64x16xf32>
    %30 = arith.truncf %29 : vector<64x16xf32> to vector<64x16xbf16>
    %c0_21 = arith.constant 0 : index
    %c0_22 = arith.constant 0 : index
    %31 = vector.load %arg5[%c0_21, %c0_22] : memref<16x64xbf16, #tpu.memory_space<vmem>>, vector<16x64xbf16>
    %cst_23 = arith.constant dense<0.000000e+00> : vector<64x64xf32>
    %32 = tpu.matmul %30, %31, %cst_23 {dimension_numbers = #tpu.dot_dimension_numbers<[1], [0], [0], [1], [0, 0, 1, 1], [], []>} : vector<64x16xbf16>, vector<16x64xbf16>, vector<64x64xf32> -> vector<64x64xf32>
    %c0_24 = arith.constant 0 : index
    %c0_25 = arith.constant 0 : index
    %33 = vector.load %arg6[%c0_24, %c0_25] : memref<1x64xf32, #tpu.memory_space<vmem>>, vector<1x64xf32>
    %34 = vector.broadcast %33 : vector<1x64xf32> to vector<64x64xf32>
    %35 = arith.addf %32, %34 : vector<64x64xf32>
    %cst_26 = arith.constant 0.000000e+00 : f32
    %36 = vector.broadcast %cst_26 : f32 to vector<64x64xf32>
    %37 = arith.maximumf %35, %36 : vector<64x64xf32>
    %38 = arith.truncf %37 : vector<64x64xf32> to vector<64x64xbf16>
    %c0_27 = arith.constant 0 : index
    %c0_28 = arith.constant 0 : index
    %39 = vector.load %arg7[%c0_27, %c0_28] : memref<64x16xbf16, #tpu.memory_space<vmem>>, vector<64x16xbf16>
    %cst_29 = arith.constant dense<0.000000e+00> : vector<64x16xf32>
    %40 = tpu.matmul %38, %39, %cst_29 {dimension_numbers = #tpu.dot_dimension_numbers<[1], [0], [0], [1], [0, 0, 1, 1], [], []>} : vector<64x64xbf16>, vector<64x16xbf16>, vector<64x16xf32> -> vector<64x16xf32>
    %c0_30 = arith.constant 0 : index
    %c0_31 = arith.constant 0 : index
    %41 = vector.load %arg8[%c0_30, %c0_31] : memref<1x16xf32, #tpu.memory_space<vmem>>, vector<1x16xf32>
    %42 = vector.broadcast %41 : vector<1x16xf32> to vector<64x16xf32>
    %43 = arith.addf %40, %42 : vector<64x16xf32>
    %cst_32 = arith.constant 0.000000e+00 : f32
    %44 = vector.broadcast %cst_32 : f32 to vector<64x16xf32>
    %45 = arith.maximumf %43, %44 : vector<64x16xf32>
    %c0_33 = arith.constant 0 : index
    %c0_34 = arith.constant 0 : index
    %46 = vector.load %arg2[%c0_33, %c0_34] : memref<64x16xbf16, #tpu.memory_space<vmem>>, vector<64x16xbf16>
    %47 = arith.extf %46 : vector<64x16xbf16> to vector<64x16xf32>
    %48 = arith.addf %45, %47 : vector<64x16xf32>
    %c0_35 = arith.constant 0 : index
    %c0_36 = arith.constant 0 : index
    %49 = vector.load %arg9[%c0_35, %c0_36] : memref<64x16xf32, #tpu.memory_space<vmem>>, vector<64x16xf32>
    tpu.vector_store %arg9[%c0_35, %c0_36], %48 {strides = array<i32>} : memref<64x16xf32, #tpu.memory_space<vmem>>, vector<64x16xf32>,
    return
  }
  func.func @transform_0(%arg0: i32) -> (i32, i32, i32) {
    %c0_i32 = arith.constant 0 : i32
    %c0_i32_0 = arith.constant 0 : i32
    %c0_i32_1 = arith.constant 0 : i32
    return %c0_i32, %arg0, %c0_i32_0 : i32, i32, i32
  }
  func.func @transform_1(%arg0: i32) -> (i32, i32) {
    %c0_i32 = arith.constant 0 : i32
    %c0_i32_0 = arith.constant 0 : i32
    return %arg0, %c0_i32 : i32, i32
  }
  func.func @transform_2(%arg0: i32) -> (i32, i32) {
    %c0_i32 = arith.constant 0 : i32
    %c0_i32_0 = arith.constant 0 : i32
    %c0_i32_1 = arith.constant 0 : i32
    return %c0_i32, %c0_i32_0 : i32, i32
  }
  func.func @transform_3(%arg0: i32) -> (i32, i32) {
    %c0_i32 = arith.constant 0 : i32
    %c0_i32_0 = arith.constant 0 : i32
    %c0_i32_1 = arith.constant 0 : i32
    return %c0_i32, %c0_i32_0 : i32, i32
  }
  func.func @transform_4(%arg0: i32) -> (i32, i32) {
    %c0_i32 = arith.constant 0 : i32
    %c0_i32_0 = arith.constant 0 : i32
    %c0_i32_1 = arith.constant 0 : i32
    return %c0_i32, %c0_i32_0 : i32, i32
  }
  func.func @transform_5(%arg0: i32) -> (i32, i32) {
    %c0_i32 = arith.constant 0 : i32
    %c0_i32_0 = arith.constant 0 : i32
    %c0_i32_1 = arith.constant 0 : i32
    return %c0_i32, %c0_i32_0 : i32, i32
  }
  func.func @transform_6(%arg0: i32) -> (i32, i32) {
    %c0_i32 = arith.constant 0 : i32
    %c0_i32_0 = arith.constant 0 : i32
    %c0_i32_1 = arith.constant 0 : i32
    return %c0_i32, %c0_i32_0 : i32, i32
  }
  func.func @transform_7(%arg0: i32) -> (i32, i32) {
    %c0_i32 = arith.constant 0 : i32
    %c0_i32_0 = arith.constant 0 : i32
    %c0_i32_1 = arith.constant 0 : i32
    return %c0_i32, %c0_i32_0 : i32, i32
  }
  func.func @transform_8(%arg0: i32) -> (i32, i32) {
    %c0_i32 = arith.constant 0 : i32
    %c0_i32_0 = arith.constant 0 : i32
    return %arg0, %c0_i32 : i32, i32
  }
}

module attributes {stable_mosaic.version = 11 : i64} {
  func.func @_invres_kernel(%arg0: i32, %arg1: memref<8x64x19xbf16, #tpu.memory_space<vmem>>, %arg2: memref<64x16xbf16, #tpu.memory_space<vmem>>, %arg3: memref<19x16xbf16, #tpu.memory_space<vmem>>, %arg4: memref<1x16xf32, #tpu.memory_space<vmem>>, %arg5: memref<16x64xbf16, #tpu.memory_space<vmem>>, %arg6: memref<1x64xf32, #tpu.memory_space<vmem>>, %arg7: memref<64x16xbf16, #tpu.memory_space<vmem>>, %arg8: memref<1x16xf32, #tpu.memory_space<vmem>>, %arg9: memref<64x16xf32, #tpu.memory_space<vmem>>) attributes {dimension_semantics = [#tpu.dimension_semantics<parallel>], iteration_bounds = array<i64: 2>, scalar_prefetch = 0 : i64, scratch_operands = 0 : i64, tpu.core_type = #tpu.core_type<tc>, window_params = [{transform_indices = @transform_0, window_bounds = array<i64: 8, 64, 19>}, {transform_indices = @transform_1, window_bounds = array<i64: 64, 16>}, {pipeline_mode = #tpu.pipeline_mode<synchronous>, transform_indices = @transform_2, window_bounds = array<i64: 19, 16>}, {pipeline_mode = #tpu.pipeline_mode<synchronous>, transform_indices = @transform_3, window_bounds = array<i64: 1, 16>}, {pipeline_mode = #tpu.pipeline_mode<synchronous>, transform_indices = @transform_4, window_bounds = array<i64: 16, 64>}, {pipeline_mode = #tpu.pipeline_mode<synchronous>, transform_indices = @transform_5, window_bounds = array<i64: 1, 64>}, {pipeline_mode = #tpu.pipeline_mode<synchronous>, transform_indices = @transform_6, window_bounds = array<i64: 64, 16>}, {pipeline_mode = #tpu.pipeline_mode<synchronous>, transform_indices = @transform_7, window_bounds = array<i64: 1, 16>}, {transform_indices = @transform_8, window_bounds = array<i64: 64, 16>}]} {
    %c0 = arith.constant 0 : index
    %c0_0 = arith.constant 0 : index
    %c0_1 = arith.constant 0 : index
    %0 = vector.load %arg1[%c0, %c0_0, %c0_1] : memref<8x64x19xbf16, #tpu.memory_space<vmem>>, vector<1x64x19xbf16>
    %1 = vector.shape_cast %0 : vector<1x64x19xbf16> to vector<64x19xbf16>
    %c1 = arith.constant 1 : index
    %c0_2 = arith.constant 0 : index
    %c0_3 = arith.constant 0 : index
    %2 = vector.load %arg1[%c1, %c0_2, %c0_3] : memref<8x64x19xbf16, #tpu.memory_space<vmem>>, vector<1x64x19xbf16>
    %3 = vector.shape_cast %2 : vector<1x64x19xbf16> to vector<64x19xbf16>
    %4 = arith.maximumf %1, %3 : vector<64x19xbf16>
    %c2 = arith.constant 2 : index
    %c0_4 = arith.constant 0 : index
    %c0_5 = arith.constant 0 : index
    %5 = vector.load %arg1[%c2, %c0_4, %c0_5] : memref<8x64x19xbf16, #tpu.memory_space<vmem>>, vector<1x64x19xbf16>
    %6 = vector.shape_cast %5 : vector<1x64x19xbf16> to vector<64x19xbf16>
    %7 = arith.maximumf %4, %6 : vector<64x19xbf16>
    %c3 = arith.constant 3 : index
    %c0_6 = arith.constant 0 : index
    %c0_7 = arith.constant 0 : index
    %8 = vector.load %arg1[%c3, %c0_6, %c0_7] : memref<8x64x19xbf16, #tpu.memory_space<vmem>>, vector<1x64x19xbf16>
    %9 = vector.shape_cast %8 : vector<1x64x19xbf16> to vector<64x19xbf16>
    %10 = arith.maximumf %7, %9 : vector<64x19xbf16>
    %c4 = arith.constant 4 : index
    %c0_8 = arith.constant 0 : index
    %c0_9 = arith.constant 0 : index
    %11 = vector.load %arg1[%c4, %c0_8, %c0_9] : memref<8x64x19xbf16, #tpu.memory_space<vmem>>, vector<1x64x19xbf16>
    %12 = vector.shape_cast %11 : vector<1x64x19xbf16> to vector<64x19xbf16>
    %13 = arith.maximumf %10, %12 : vector<64x19xbf16>
    %c5 = arith.constant 5 : index
    %c0_10 = arith.constant 0 : index
    %c0_11 = arith.constant 0 : index
    %14 = vector.load %arg1[%c5, %c0_10, %c0_11] : memref<8x64x19xbf16, #tpu.memory_space<vmem>>, vector<1x64x19xbf16>
    %15 = vector.shape_cast %14 : vector<1x64x19xbf16> to vector<64x19xbf16>
    %16 = arith.maximumf %13, %15 : vector<64x19xbf16>
    %c6 = arith.constant 6 : index
    %c0_12 = arith.constant 0 : index
    %c0_13 = arith.constant 0 : index
    %17 = vector.load %arg1[%c6, %c0_12, %c0_13] : memref<8x64x19xbf16, #tpu.memory_space<vmem>>, vector<1x64x19xbf16>
    %18 = vector.shape_cast %17 : vector<1x64x19xbf16> to vector<64x19xbf16>
    %19 = arith.maximumf %16, %18 : vector<64x19xbf16>
    %c7 = arith.constant 7 : index
    %c0_14 = arith.constant 0 : index
    %c0_15 = arith.constant 0 : index
    %20 = vector.load %arg1[%c7, %c0_14, %c0_15] : memref<8x64x19xbf16, #tpu.memory_space<vmem>>, vector<1x64x19xbf16>
    %21 = vector.shape_cast %20 : vector<1x64x19xbf16> to vector<64x19xbf16>
    %22 = arith.maximumf %19, %21 : vector<64x19xbf16>
    %c0_16 = arith.constant 0 : index
    %c0_17 = arith.constant 0 : index
    %23 = vector.load %arg3[%c0_16, %c0_17] : memref<19x16xbf16, #tpu.memory_space<vmem>>, vector<19x16xbf16>
    %cst = arith.constant dense<0.000000e+00> : vector<64x16xf32>
    %24 = tpu.matmul %22, %23, %cst {dimension_numbers = #tpu.dot_dimension_numbers<[1], [0], [0], [1], [0, 0, 1, 1], [], []>} : vector<64x19xbf16>, vector<19x16xbf16>, vector<64x16xf32> -> vector<64x16xf32>
    %c0_18 = arith.constant 0 : index
    %c0_19 = arith.constant 0 : index
    %25 = vector.load %arg4[%c0_18, %c0_19] : memref<1x16xf32, #tpu.memory_space<vmem>>, vector<1x16xf32>
    %26 = vector.broadcast %25 : vector<1x16xf32> to vector<64x16xf32>
    %27 = arith.addf %24, %26 : vector<64x16xf32>
    %cst_20 = arith.constant 0.000000e+00 : f32
    %28 = vector.broadcast %cst_20 : f32 to vector<64x16xf32>
    %29 = arith.maximumf %27, %28 : vector<64x16xf32>
    %30 = arith.truncf %29 : vector<64x16xf32> to vector<64x16xbf16>
    %c0_21 = arith.constant 0 : index
    %c0_22 = arith.constant 0 : index
    %31 = vector.load %arg5[%c0_21, %c0_22] : memref<16x64xbf16, #tpu.memory_space<vmem>>, vector<16x64xbf16>
    %cst_23 = arith.constant dense<0.000000e+00> : vector<64x64xf32>
    %32 = tpu.matmul %30, %31, %cst_23 {dimension_numbers = #tpu.dot_dimension_numbers<[1], [0], [0], [1], [0, 0, 1, 1], [], []>} : vector<64x16xbf16>, vector<16x64xbf16>, vector<64x64xf32> -> vector<64x64xf32>
    %c0_24 = arith.constant 0 : index
    %c0_25 = arith.constant 0 : index
    %33 = vector.load %arg6[%c0_24, %c0_25] : memref<1x64xf32, #tpu.memory_space<vmem>>, vector<1x64xf32>
    %34 = vector.broadcast %33 : vector<1x64xf32> to vector<64x64xf32>
    %35 = arith.addf %32, %34 : vector<64x64xf32>
    %cst_26 = arith.constant 0.000000e+00 : f32
    %36 = vector.broadcast %cst_26 : f32 to vector<64x64xf32>
    %37 = arith.maximumf %35, %36 : vector<64x64xf32>
    %38 = arith.truncf %37 : vector<64x64xf32> to vector<64x64xbf16>
    %c0_27 = arith.constant 0 : index
    %c0_28 = arith.constant 0 : index
    %39 = vector.load %arg7[%c0_27, %c0_28] : memref<64x16xbf16, #tpu.memory_space<vmem>>, vector<64x16xbf16>
    %cst_29 = arith.constant dense<0.000000e+00> : vector<64x16xf32>
    %40 = tpu.matmul %38, %39, %cst_29 {dimension_numbers = #tpu.dot_dimension_numbers<[1], [0], [0], [1], [0, 0, 1, 1], [], []>} : vector<64x64xbf16>, vector<64x16xbf16>, vector<64x16xf32> -> vector<64x16xf32>
    %c0_30 = arith.constant 0 : index
    %c0_31 = arith.constant 0 : index
    %41 = vector.load %arg8[%c0_30, %c0_31] : memref<1x16xf32, #tpu.memory_space<vmem>>, vector<1x16xf32>
    %42 = vector.broadcast %41 : vector<1x16xf32> to vector<64x16xf32>
    %43 = arith.addf %40, %42 : vector<64x16xf32>
    %cst_32 = arith.constant 0.000000e+00 : f32
    %44 = vector.broadcast %cst_32 : f32 to vector<64x16xf32>
    %45 = arith.maximumf %43, %44 : vector<64x16xf32>
    %c0_33 = arith.constant 0 : index
    %c0_34 = arith.constant 0 : index
    %46 = vector.load %arg2[%c0_33, %c0_34] : memref<64x16xbf16, #tpu.memory_space<vmem>>, vector<64x16xbf16>
    %47 = arith.extf %46 : vector<64x16xbf16> to vector<64x16xf32>
    %48 = arith.addf %45, %47 : vector<64x16xf32>
    %c0_35 = arith.constant 0 : index
    %c0_36 = arith.constant 0 : index
    %49 = vector.load %arg9[%c0_35, %c0_36] : memref<64x16xf32, #tpu.memory_space<vmem>>, vector<64x16xf32>
    tpu.vector_store %arg9[%c0_35, %c0_36], %48 {strides = array<i32>} : memref<64x16xf32, #tpu.memory_space<vmem>>, vector<64x16xf32>,
    return
  }
  func.func @transform_0(%arg0: i32) -> (i32, i32, i32) {
    %c0_i32 = arith.constant 0 : i32
    %c0_i32_0 = arith.constant 0 : i32
    %c0_i32_1 = arith.constant 0 : i32
    return %c0_i32, %arg0, %c0_i32_0 : i32, i32, i32
  }
  func.func @transform_1(%arg0: i32) -> (i32, i32) {
    %c0_i32 = arith.constant 0 : i32
    %c0_i32_0 = arith.constant 0 : i32
    return %arg0, %c0_i32 : i32, i32
  }
  func.func @transform_2(%arg0: i32) -> (i32, i32) {
    %c0_i32 = arith.constant 0 : i32
    %c0_i32_0 = arith.constant 0 : i32
    %c0_i32_1 = arith.constant 0 : i32
    return %c0_i32, %c0_i32_0 : i32, i32
  }
  func.func @transform_3(%arg0: i32) -> (i32, i32) {
    %c0_i32 = arith.constant 0 : i32
    %c0_i32_0 = arith.constant 0 : i32
    %c0_i32_1 = arith.constant 0 : i32
    return %c0_i32, %c0_i32_0 : i32, i32
  }
  func.func @transform_4(%arg0: i32) -> (i32, i32) {
    %c0_i32 = arith.constant 0 : i32
    %c0_i32_0 = arith.constant 0 : i32
    %c0_i32_1 = arith.constant 0 : i32
    return %c0_i32, %c0_i32_0 : i32, i32
  }
  func.func @transform_5(%arg0: i32) -> (i32, i32) {
    %c0_i32 = arith.constant 0 : i32
    %c0_i32_0 = arith.constant 0 : i32
    %c0_i32_1 = arith.constant 0 : i32
    return %c0_i32, %c0_i32_0 : i32, i32
  }
  func.func @transform_6(%arg0: i32) -> (i32, i32) {
    %c0_i32 = arith.constant 0 : i32
    %c0_i32_0 = arith.constant 0 : i32
    %c0_i32_1 = arith.constant 0 : i32
    return %c0_i32, %c0_i32_0 : i32, i32
  }
  func.func @transform_7(%arg0: i32) -> (i32, i32) {
    %c0_i32 = arith.constant 0 : i32
    %c0_i32_0 = arith.constant 0 : i32
    %c0_i32_1 = arith.constant 0 : i32
    return %c0_i32, %c0_i32_0 : i32, i32
  }
  func.func @transform_8(%arg0: i32) -> (i32, i32) {
    %c0_i32 = arith.constant 0 : i32
    %c0_i32_0 = arith.constant 0 : i32
    return %arg0, %c0_i32 : i32, i32
  }
}

</mosaic_0001>

<bundles_post_ra>
// kernel: tpu_custom_call.1
= control target key start
LH: loop header
LB: loop body
LE: loop exit
PB: predicated region body
PF: predicated region fallthrough
CT: control target
= control target key end

     0   :  { %s1510_s27 = smov 0   ;;  %s1512_s28 = smov 0   ;;  %s1765_s0 = inlined_call_operand.vmem [shape: bf16[8,128,19], index: 0, kind: input, shape index: {}]   ;;  %s1766_s1 = inlined_call_operand.vmem [shape: bf16[128,16], index: 1, kind: input, shape index: {}]   ;;  %s1767_s2 = inlined_call_operand.vmem [shape: bf16[19,16], index: 2, kind: input, shape index: {}]   ;;  %s1768_s3 = inlined_call_operand.vmem [shape: f32[1,16], index: 3, kind: input, shape index: {}]   ;;  %s1769_s4 = inlined_call_operand.vmem [shape: bf16[16,64], index: 4, kind: input, shape index: {}]   ;;  %s1770_s5 = inlined_call_operand.vmem [shape: f32[1,64], index: 5, kind: input, shape index: {}]   ;;  %s1771_s6 = inlined_call_operand.vmem [shape: bf16[64,16], index: 6, kind: input, shape index: {}]   ;;  %s1772_s7 = inlined_call_operand.vmem [shape: f32[1,16], index: 7, kind: input, shape index: {}]   ;;  %s1773_s8 = inlined_call_operand.vmem [shape: f32[128,16], index: 8, kind: output, shape index: {}]  }
   0x1   :  { %s1514_s29 = smov 0  }
   0x2 LB: > { %s1226_s30 = sadd.s32 4294967295, %s1462_s29   ;;  %s1527_s9 = sadd.s32 1, %s1462_s29   ;;  %s1462_s29 = sphi %s1514_s29, %s1776_s29   ;;  %s1458_s28 = sphi %s1512_s28, %s1775_s28   ;;  %s1454_s27 = sphi %s1510_s27, %s1774_s27  }
   0x3   : > { %s22_s10 = ssub.s32 %s1462_s29, %s1527_s9  ;;  %s25_s11 = sadd.s32 1, %s1458_s28 }
   0x4   : > { %p23_p0 = scmp.eq.s32.totalorder %s22_s10, 0  ;;  %p32_p1 = scmp.ne.s32.totalorder %s1458_s28, %s1454_s27 }
   0x5   : > { %p33_p2 = scmp.eq.s32.totalorder %s1462_s29, 0  ;;  %p1229_p4 = scmp.ge.s32.totalorder %s1462_s29, 2 }
   0x6   : > { %s1536_s12 = scalar_select %p23_p0, %s1458_s28, %s25_s11  }
   0x7   : > { %p34_p3 = por %p33_p2, %p32_p1  ;;  %254 = sbr.rel (%p1229_p4) target bundleno = 32 (0x20), region = 40 }
   0xc   : > { %257 = sbr.rel (!%p34_p3) target bundleno = 32 (0x20), region = 44  ;;  %s259_s13 = sand.u32 (%p34_p3), 1, %s1458_s28  }
   0xd   : > { %s1323_s14 = sshll.u32 (%p34_p3), %s1462_s29, 5  ;;  %s1230_s15 = sshll.u32 (%p34_p3), %s259_s13, 8 }
   0xe   : > { %s1544_s18 = scalar_lea.vmem (%p34_p3), %s1765_s0, %s1323_s14  ;;  %s1549_s19 = scalar_lea.vmem (%p34_p3), [#allocation2], %s1230_s15 }
   0xf   : > { %v281_v0 = vld [vmem:[%s1544_s18] sm:$0xff] (%p34_p3)   ;;  %v285_v1 = vld [vmem:[%s1544_s18 + $0x8] sm:$0xff] (%p34_p3)   ;;  %v289_v2 = vld [vmem:[%s1544_s18 + $0x10] sm:$0xff] (%p34_p3)  }
  0x10   : > { %282 = vst [vmem:[%s1549_s19] sm:$0xff] (%p34_p3), %v281_v0   ;;  %286 = vst [vmem:[%s1549_s19 + $0x8] sm:$0xff] (%p34_p3), %v285_v1   ;;  %v293_v3 = vld [vmem:[%s1544_s18 + $0x18] sm:$0xff] (%p34_p3)   ;;  %v297_v4 = vld [vmem:[%s1544_s18 + $0x40] sm:$0xff] (%p34_p3)  }
  0x11   : > { %290 = vst [vmem:[%s1549_s19 + $0x10] sm:$0xff] %v289_v2   ;;  %v301_v5 = vld [vmem:[%s1544_s18 + $0x48] sm:$0xff]   ;;  %294 = vst [vmem:[%s1549_s19 + $0x18] sm:$0xff] %v293_v3   ;;  %v305_v6 = vld [vmem:[%s1544_s18 + $0x50] sm:$0xff]  }
  0x12   : > { %298 = vst [vmem:[%s1549_s19 + $0x20] sm:$0xff] %v297_v4   ;;  %302 = vst [vmem:[%s1549_s19 + $0x28] sm:$0xff] %v301_v5   ;;  %v309_v7 = vld [vmem:[%s1544_s18 + $0x58] sm:$0xff]   ;;  %v313_v8 = vld [vmem:[%s1544_s18 + $0x80] sm:$0xff]  }
  0x13   : > { %306 = vst [vmem:[%s1549_s19 + $0x30] sm:$0xff] %v305_v6   ;;  %310 = vst [vmem:[%s1549_s19 + $0x38] sm:$0xff] %v309_v7   ;;  %v317_v9 = vld [vmem:[%s1544_s18 + $0x88] sm:$0xff]   ;;  %v321_v10 = vld [vmem:[%s1544_s18 + $0x90] sm:$0xff]  }
  0x14   : > { %314 = vst [vmem:[%s1549_s19 + $0x40] sm:$0xff] %v313_v8   ;;  %v325_v11 = vld [vmem:[%s1544_s18 + $0x98] sm:$0xff]   ;;  %318 = vst [vmem:[%s1549_s19 + $0x48] sm:$0xff] %v317_v9   ;;  %v329_v12 = vld [vmem:[%s1544_s18 + $0xc0] sm:$0xff]  }
  0x15   : > { %322 = vst [vmem:[%s1549_s19 + $0x50] sm:$0xff] %v321_v10   ;;  %326 = vst [vmem:[%s1549_s19 + $0x58] sm:$0xff] %v325_v11   ;;  %v333_v13 = vld [vmem:[%s1544_s18 + $0xc8] sm:$0xff]   ;;  %v337_v14 = vld [vmem:[%s1544_s18 + $0xd0] sm:$0xff]  }
  0x16   : > { %330 = vst [vmem:[%s1549_s19 + $0x60] sm:$0xff] %v329_v12   ;;  %334 = vst [vmem:[%s1549_s19 + $0x68] sm:$0xff] %v333_v13   ;;  %v341_v15 = vld [vmem:[%s1544_s18 + $0xd8] sm:$0xff]   ;;  %v345_v16 = vld [vmem:[%s1544_s18 + $0x100] sm:$0xff]  }
  0x17   : > { %338 = vst [vmem:[%s1549_s19 + $0x70] sm:$0xff] %v337_v14   ;;  %v349_v17 = vld [vmem:[%s1544_s18 + $0x108] sm:$0xff]   ;;  %342 = vst [vmem:[%s1549_s19 + $0x78] sm:$0xff] %v341_v15   ;;  %v353_v18 = vld [vmem:[%s1544_s18 + $0x110] sm:$0xff]  }
  0x18   : > { %346 = vst [vmem:[%s1549_s19 + $0x80] sm:$0xff] %v345_v16   ;;  %350 = vst [vmem:[%s1549_s19 + $0x88] sm:$0xff] %v349_v17   ;;  %v357_v19 = vld [vmem:[%s1544_s18 + $0x118] sm:$0xff]   ;;  %v361_v20 = vld [vmem:[%s1544_s18 + $0x140] sm:$0xff]  }
  0x19   : > { %354 = vst [vmem:[%s1549_s19 + $0x90] sm:$0xff] %v353_v18   ;;  %358 = vst [vmem:[%s1549_s19 + $0x98] sm:$0xff] %v357_v19   ;;  %v365_v21 = vld [vmem:[%s1544_s18 + $0x148] sm:$0xff]   ;;  %v369_v22 = vld [vmem:[%s1544_s18 + $0x150] sm:$0xff]  }
  0x1a   : > { %362 = vst [vmem:[%s1549_s19 + $0xa0] sm:$0xff] %v361_v20   ;;  %v373_v23 = vld [vmem:[%s1544_s18 + $0x158] sm:$0xff]   ;;  %366 = vst [vmem:[%s1549_s19 + $0xa8] sm:$0xff] %v365_v21   ;;  %v377_v24 = vld [vmem:[%s1544_s18 + $0x180] sm:$0xff]  }
  0x1b   : > { %370 = vst [vmem:[%s1549_s19 + $0xb0] sm:$0xff] %v369_v22   ;;  %374 = vst [vmem:[%s1549_s19 + $0xb8] sm:$0xff] %v373_v23   ;;  %v381_v25 = vld [vmem:[%s1544_s18 + $0x188] sm:$0xff]   ;;  %v385_v26 = vld [vmem:[%s1544_s18 + $0x190] sm:$0xff]  }
  0x1c   : > { %378 = vst [vmem:[%s1549_s19 + $0xc0] sm:$0xff] %v377_v24   ;;  %382 = vst [vmem:[%s1549_s19 + $0xc8] sm:$0xff] %v381_v25   ;;  %v389_v27 = vld [vmem:[%s1544_s18 + $0x198] sm:$0xff]   ;;  %v393_v28 = vld [vmem:[%s1544_s18 + $0x1c0] sm:$0xff]  }
  0x1d   : > { %386 = vst [vmem:[%s1549_s19 + $0xd0] sm:$0xff] %v385_v26   ;;  %v397_v29 = vld [vmem:[%s1544_s18 + $0x1c8] sm:$0xff]   ;;  %390 = vst [vmem:[%s1549_s19 + $0xd8] sm:$0xff] %v389_v27   ;;  %v401_v30 = vld [vmem:[%s1544_s18 + $0x1d0] sm:$0xff]  }
  0x1e   : > { %394 = vst [vmem:[%s1549_s19 + $0xe0] sm:$0xff] %v393_v28   ;;  %398 = vst [vmem:[%s1549_s19 + $0xe8] sm:$0xff] %v397_v29   ;;  %v405_v31 = vld [vmem:[%s1544_s18 + $0x1d8] sm:$0xff]  }
  0x1f   : > { %402 = vst [vmem:[%s1549_s19 + $0xf0] sm:$0xff] %v401_v30   ;;  %406 = vst [vmem:[%s1549_s19 + $0xf8] sm:$0xff] %v405_v31  }
  0x20 PF: > { %p1233_p5 = scmp.ge.s32.totalorder %s1462_s29, 1  ;;  %p568_p6 = scmp.lt.s32.totalorder %s1462_s29, 3 }
  0x22   : > { %p569_p7 = pnand %p1233_p5, %p568_p6 }
  0x23   : > { %s575_s22 = sand.u32 (!%p569_p7), 1, %s1454_s27   ;;  %s1235_s24 = sshll.u32 (!%p569_p7), %s1226_s30, 3 }
  0x24   : > { %572 = sbr.rel (%p569_p7) target bundleno = 693 (0x2b5), region = 89  ;;  %s1234_s23 = sshll.u32 (!%p569_p7), %s575_s22, 8 }
  0x25   : > { %s1621_s26 = scalar_lea.vmem (!%p569_p7), [#allocation2], %s1234_s23  ;;  %p615_p8 = scmp.lt.s32.totalorder (!%p569_p7), %s1235_s24, 15 }
  0x29   : > { %v1433_v32 = vld [vmem:[%s1767_s2 + $0x8] ss:$0 sps:$4 sm:$0x33]   ;;  %vm806_vm0 = vcmask 1040384   ;;  %vm807_vm1 = vcmask 1041408   ;;  %v1464_v33 = vmov 65535  }
  0x2a   : > { %v808_v34 = vsel %vm806_vm0, 4294967295, %v1464_v33  ;;  %v1434_v37 = vld [vmem:[%s1767_s2] sm:$0xff]   ;;  %v629_v55 = vld [vmem:[%s1621_s26 + $0x8] sm:$0xf]  ;;  %v630_v56 = vld [vmem:[%s1621_s26 + $0xc] sm:$0xf] }
  0x2b   : > { %v809_v35 = vsel %vm807_vm1, %v808_v34, 0  ;;  %v627_v38 = vld [vmem:[%s1621_s26] sm:$0xf]  ;;  %v628_v39 = vld [vmem:[%s1621_s26 + $0x4] sm:$0xf]  ;;  %vm793_vm2 = vcmask 154624  }
  0x2c   : > { %v811_v36 = vand.u32 %v1433_v32, %v809_v35  ;;  %v1239_v40 = vld [vmem:[%s1621_s26 + $0x20] sm:$0xf]  ;;  %v1240_v41 = vld [vmem:[%s1621_s26 + $0x24] sm:$0xf]  ;;  %v1241_v58 = vld [vmem:[%s1621_s26 + $0x28] sm:$0xf] }
  0x2d   : > { %v644_v42 = vmax.bf16 %v1239_v40, %v627_v38  ;;  %v1247_v43 = vld [vmem:[%s1621_s26 + $0x40] sm:$0xf]  ;;  %v1248_v44 = vld [vmem:[%s1621_s26 + $0x44] sm:$0xf]  ;;  %v645_v45 = vmax.bf16 %v1240_v41, %v628_v39  ;;  %v1242_v59 = vld [vmem:[%s1621_s26 + $0x2c] sm:$0xf]  ;;  %v646_v0 = vmax.bf16 %v1241_v58, %v629_v55 }
  0x2e   : > { %1362 = vmatprep.subr.bf16.mxu0 %v811_v36  ;;  %v1255_v46 = vld [vmem:[%s1621_s26 + $0x60] sm:$0xf]  ;;  %v1256_v48 = vld [vmem:[%s1621_s26 + $0x64] sm:$0xf]  ;;  %v1249_v60 = vld [vmem:[%s1621_s26 + $0x48] sm:$0xf]  ;;  %v647_v1 = vmax.bf16 %v1242_v59, %v630_v56 }
  0x2f   : > { %1363 = vmatpush3.bf16.msra.mxu0 %v811_v36  ;;  %v661_v47 = vmax.bf16 %v1247_v43, %v644_v42  ;;  %v662_v49 = vmax.bf16 %v1248_v44, %v645_v45  ;;  %v1263_v50 = vld [vmem:[%s1621_s26 + $0x80] sm:$0xf]  ;;  %v1264_v51 = vld [vmem:[%s1621_s26 + $0x84] sm:$0xf]  ;;  %v1250_v2 = vld [vmem:[%s1621_s26 + $0x4c] sm:$0xf]  ;;  %v663_v9 = vmax.bf16 %v1249_v60, %v646_v0 }
  0x30   : > { %1364 = vmatprep.subr.bf16.mxu0 %v1434_v37  ;;  %v1271_v52 = vld [vmem:[%s1621_s26 + $0xa0] sm:$0xf]  ;;  %v1272_v54 = vld [vmem:[%s1621_s26 + $0xa4] sm:$0xf]  ;;  %v1257_v5 = vld [vmem:[%s1621_s26 + $0x68] sm:$0xf]  ;;  %v664_v10 = vmax.bf16 %v1250_v2, %v647_v1 }
  0x31   : > { %v678_v53 = vmax.bf16 %v1255_v46, %v661_v47  ;;  %v679_v57 = vmax.bf16 %v1256_v48, %v662_v49  ;;  %v1279_v62 = vld [vmem:[%s1621_s26 + $0xc0] sm:$0xf]  ;;  %v1280_v63 = vld [vmem:[%s1621_s26 + $0xc4] sm:$0xf]  ;;  %v1258_v6 = vld [vmem:[%s1621_s26 + $0x6c] sm:$0xf]  ;;  %v680_v18 = vmax.bf16 %v1257_v5, %v663_v9 }
  0x32   : > { %v1287_v4 = vld [vmem:[%s1621_s26 + $0xe0] sm:$0xf]  ;;  %v1288_v8 = vld [vmem:[%s1621_s26 + $0xe4] sm:$0xf]  ;;  %v1265_v11 = vld [vmem:[%s1621_s26 + $0x88] sm:$0xf]  ;;  %v681_v19 = vmax.bf16 %v1258_v6, %v664_v10 }
  0x33   : > { %1365 = vmatpush3.bf16.msra.mxu0 %v1434_v37  ;;  %v695_v61 = vmax.bf16 %v1263_v50, %v678_v53  ;;  %v696_v3 = vmax.bf16 %v1264_v51, %v679_v57  ;;  %v1266_v12 = vld [vmem:[%s1621_s26 + $0x8c] sm:$0xf]  ;;  %v1273_v14 = vld [vmem:[%s1621_s26 + $0xa8] sm:$0xf]  ;;  %v631_v16 = vld [vmem:[%s1621_s26 + $0x10] sm:$0xf]  ;;  %v697_v30 = vmax.bf16 %v1265_v11, %v680_v18 }
  0x34   : > { %v1274_v15 = vld [vmem:[%s1621_s26 + $0xac] sm:$0xf]  ;;  %v632_v20 = vld [vmem:[%s1621_s26 + $0x14] sm:$0xf]  ;;  %v1243_v21 = vld [vmem:[%s1621_s26 + $0x30] sm:$0xf]  ;;  %v698_v31 = vmax.bf16 %v1266_v12, %v681_v19 }
  0x35   : > { %v712_v7 = vmax.bf16 %v1271_v52, %v695_v61  ;;  %v713_v13 = vmax.bf16 %v1272_v54, %v696_v3  ;;  %v1244_v22 = vld [vmem:[%s1621_s26 + $0x34] sm:$0xf]  ;;  %v1281_v24 = vld [vmem:[%s1621_s26 + $0xc8] sm:$0xf]  ;;  %v648_v25 = vmax.bf16 %v1243_v21, %v631_v16  ;;  %v1251_v27 = vld [vmem:[%s1621_s26 + $0x50] sm:$0xf]  ;;  %v714_v41 = vmax.bf16 %v1273_v14, %v697_v30 }
  0x36   : > { %v649_v26 = vmax.bf16 %v1244_v22, %v632_v20  ;;  %v1252_v28 = vld [vmem:[%s1621_s26 + $0x54] sm:$0xf]  ;;  %v1282_v32 = vld [vmem:[%s1621_s26 + $0xcc] sm:$0xf]  ;;  %v1259_v33 = vld [vmem:[%s1621_s26 + $0x70] sm:$0xf]  ;;  %v715_v42 = vmax.bf16 %v1274_v15, %v698_v31 }
  0x37   : > { %v729_v17 = vmax.bf16 %v1279_v62, %v712_v7  ;;  %v730_v23 = vmax.bf16 %v1280_v63, %v713_v13  ;;  %v1260_v34 = vld [vmem:[%s1621_s26 + $0x74] sm:$0xf]  ;;  %v1289_v36 = vld [vmem:[%s1621_s26 + $0xe8] sm:$0xf]  ;;  %v1290_v37 = vld [vmem:[%s1621_s26 + $0xec] sm:$0xf]  ;;  %v665_v38 = vmax.bf16 %v1251_v27, %v648_v25  ;;  %v731_v52 = vmax.bf16 %v1281_v24, %v714_v41 }
  0x38   : > { %v666_v39 = vmax.bf16 %v1252_v28, %v649_v26  ;;  %v1267_v40 = vld [vmem:[%s1621_s26 + $0x90] sm:$0xf]  ;;  %v1268_v43 = vld [vmem:[%s1621_s26 + $0x94] sm:$0xf]  ;;  %v633_v49 = vld [vmem:[%s1621_s26 + $0x18] sm:$0xf]  ;;  %v732_v53 = vmax.bf16 %v1282_v32, %v715_v42 }
  0x39   : > { %v746_v29 = vmax.bf16 %v1287_v4, %v729_v17  ;;  %v747_v35 = vmax.bf16 %v1288_v8, %v730_v23  ;;  %v1275_v44 = vld [vmem:[%s1621_s26 + $0xb0] sm:$0xf]  ;;  %v1276_v45 = vld [vmem:[%s1621_s26 + $0xb4] sm:$0xf]  ;;  %v682_v47 = vmax.bf16 %v1259_v33, %v665_v38  ;;  %v634_v50 = vld [vmem:[%s1621_s26 + $0x1c] sm:$0xf]  ;;  %v748_v63 = vmax.bf16 %v1289_v36, %v731_v52 }
  0x3a   : > { %v683_v48 = vmax.bf16 %v1260_v34, %v666_v39  ;;  %v1245_v51 = vld [vmem:[%s1621_s26 + $0x38] sm:$0xf]  ;;  %v1246_v54 = vld [vmem:[%s1621_s26 + $0x3c] sm:$0xf]  ;;  %v1283_v60 = vld [vmem:[%s1621_s26 + $0xd0] sm:$0xf]  ;;  %v749_v0 = vmax.bf16 %v1290_v37, %v732_v53 }
  0x3b   : > { %v1296_v46 = vcombine.low %v746_v29, %v747_v35  ;;  %v650_v55 = vmax.bf16 %v1245_v51, %v633_v49  ;;  %v1253_v56 = vld [vmem:[%s1621_s26 + $0x58] sm:$0xf]  ;;  %v1254_v57 = vld [vmem:[%s1621_s26 + $0x5c] sm:$0xf]  ;;  %v699_v58 = vmax.bf16 %v1267_v40, %v682_v47  ;;  %v651_v61 = vmax.bf16 %v1246_v54, %v634_v50  ;;  %v1284_v1 = vld [vmem:[%s1621_s26 + $0xd4] sm:$0xf] }
  0x3c   : > { %v700_v59 = vmax.bf16 %v1268_v43, %v683_v48  ;;  %v1261_v62 = vld [vmem:[%s1621_s26 + $0x78] sm:$0xf]  ;;  %v1291_v2 = vld [vmem:[%s1621_s26 + $0xf0] sm:$0xf]  ;;  %v1262_v4 = vld [vmem:[%s1621_s26 + $0x7c] sm:$0xf]  ;;  %v1297_v11 = vcombine.low %v748_v63, %v749_v0 }
  0x3d   : > { %1366 = vmatprep.mubr.msk.bf16.mxu0 %vm793_vm2, %v1296_v46  ;;  %v667_v3 = vmax.bf16 %v1253_v56, %v650_v55  ;;  %v716_v5 = vmax.bf16 %v1275_v44, %v699_v58  ;;  %v1292_v7 = vld [vmem:[%s1621_s26 + $0xf4] sm:$0xf]  ;;  %v668_v8 = vmax.bf16 %v1254_v57, %v651_v61  ;;  %v1269_v9 = vld [vmem:[%s1621_s26 + $0x98] sm:$0xf]  ;;  %v1270_v10 = vld [vmem:[%s1621_s26 + $0x9c] sm:$0xf] }
  0x3e   : > { %v717_v6 = vmax.bf16 %v1276_v45, %v700_v59  ;;  %v1277_v13 = vld [vmem:[%s1621_s26 + $0xb8] sm:$0xf]  ;;  %1367 = vmatmul.mubr.msk.bf16.vlgmr.msra.gmra.mxu0 %vm793_vm2, %v1297_v11  ;;  %v1278_v18 = vld [vmem:[%s1621_s26 + $0xbc] sm:$0xf]  ;;  %v1435_v34 = vld [vmem:[%s1769_s4] sm:$0xff]   ;;  %vm905_vm3 = vcmask 130048  }
  0x3f   : > { %v684_v12 = vmax.bf16 %v1261_v62, %v667_v3  ;;  %v733_v14 = vmax.bf16 %v1283_v60, %v716_v5  ;;  %v685_v16 = vmax.bf16 %v1262_v4, %v668_v8  ;;  %v1285_v22 = vld [vmem:[%s1621_s26 + $0xd8] sm:$0xf]  ;;  %v1286_v24 = vld [vmem:[%s1621_s26 + $0xdc] sm:$0xf]  ;;  %1374 = vmatprep.subr.bf16.mxu1 %v1435_v34  ;;  %v1295_v38 = vld [vmem:[%s1768_s3] ss:$0 sm:$0xff] }
  0x40   : > { %v734_v15 = vmax.bf16 %v1284_v1, %v717_v6  ;;  %v1293_v27 = vld [vmem:[%s1621_s26 + $0xf8] sm:$0xf]  ;;  %v1294_v29 = vld [vmem:[%s1621_s26 + $0xfc] sm:$0xf]  ;;  %1375 = vmatpush3.bf16.msra.mxu1 %v1435_v34  ;;  %v1437_v1 = vld [vmem:[%s1771_s6 + $0x10] sm:$0xff]   ;;  %vm1034_vm4 = vcmask 523264  }
  0x41   : > { %v701_v17 = vmax.bf16 %v1269_v9, %v684_v12  ;;  %v750_v19 = vmax.bf16 %v1291_v2, %v733_v14  ;;  %v702_v21 = vmax.bf16 %v1270_v10, %v685_v16  ;;  %v1436_v35 = vld [vmem:[%s1771_s6 + $0x18] sm:$0xff]   ;;  %v1438_v2 = vld [vmem:[%s1771_s6 + $0x8] sm:$0xff]   ;;  %v1439_v3 = vld [vmem:[%s1771_s6] sm:$0xff]   ;;  %s1778_s24 = smov (!%p615_p8, %s1235_s24), 15 }
  0x42   : > { %v751_v20 = vmax.bf16 %v1292_v7, %v734_v15  ;;  %1384 = vmatprep.subr.bf16.mxu0 %v1436_v35  ;;  %1400 = vmatprep.subr.bf16.mxu1 %v1436_v35  ;;  %v1306_v6 = vld [vmem:[%s1770_s5] ss:$0 sm:$0xff]  ;;  %s1236_s25 = sshll.u32 %s1778_s24, 2  ;;  %s1238_s14 = sshll.u32 %s1778_s24, 3 }
  0x43   : > { %v718_v23 = vmax.bf16 %v1277_v13, %v701_v17  ;;  %v719_v26 = vmax.bf16 %v1278_v18, %v702_v21  ;;  %1385 = vmatpush3.bf16.msra.mxu0 %v1436_v35  ;;  %s1725_s10 = scalar_lea.vmem %s1766_s1, %s1236_s25  ;;  %s1735_s15 = scalar_lea.vmem %s1773_s8, %s1238_s14 }
  0x44   : > { %v1298_v25 = vcombine.low %v750_v19, %v751_v20  ;;  %1386 = vmatprep.subr.bf16.mxu0 %v1437_v1  ;;  %v1340_v34 = vld [vmem:[%s1725_s10 + $0x8] sm:$0xff]  }
  0x45   : > { %v735_v28 = vmax.bf16 %v1285_v22, %v718_v23  ;;  %v736_v30 = vmax.bf16 %v1286_v24, %v719_v26 }
  0x46   : > { %1370 = vmatprep.mubr.msk.bf16.mxu0 %vm793_vm2, %v1298_v25 }
  0x47   : > { %v752_v31 = vmax.bf16 %v1293_v27, %v735_v28  ;;  %v753_v32 = vmax.bf16 %v1294_v29, %v736_v30  ;;  %1387 = vmatpush3.bf16.msra.mxu0 %v1437_v1 }
  0x48   : > { %1388 = vmatprep.subr.bf16.mxu0 %v1438_v2 }
  0x49   : > { %v1299_v33 = vcombine.low %v752_v31, %v753_v32 }
  0x4b   : > { %1371 = vmatmul.mubr.msk.bf16.gmra.mxu0 %vm793_vm2, %v1299_v33  ;;  %v1312_v33 = vld [vmem:[%s1772_s7] ss:$0 sm:$0xff] }
  0x4c   : > { %1389 = vmatpush3.bf16.msra.mxu0 %v1438_v2 }
  0x4d   : > { %1390 = vmatprep.subr.bf16.mxu0 %v1439_v3 }
  0x50   : > { %1391 = vmatpush3.bf16.msra.mxu0 %v1439_v3 }
  0xfe   : > { %v1368_v36 = vpop.f32.mrf.mxu0 }
  0xff   : > { %v856_v42 = vadd.f32 %v1368_v36, %v1295_v38  ;;  %v1325_v36 = vld [vmem:[%s1725_s10] sm:$0xff]  }
 0x100   : > { %v847_v37 = vpop.f32.mrf.mxu0 }
 0x101   : > { %v848_v40 = vadd.f32 %v1295_v38, %v847_v37  ;;  %v880_v48 = vmax.f32 %v856_v42, 0.0  ;;  %v1326_v42 = vunpack.c.l.bf16 %v1325_v36 }
 0x102   : > { %v1369_v39 = vpop.f32.mrf.mxu0 }
 0x103   : > { %v859_v41 = vadd.f32 %v1369_v39, %v1295_v38  ;;  %v878_v46 = vmax.f32 %v848_v40, 0.0 }
 0x104   : > { %v850_v43 = vpop.f32.mrf.mxu0 }
 0x105   : > { %v851_v44 = vadd.f32 %v1295_v38, %v850_v43  ;;  %v881_v45 = vmax.f32 %v859_v41, 0.0 }
 0x107   : > { %v879_v47 = vmax.f32 %v851_v44, 0.0  ;;  %v887_v51 = vpack.c.bf16 %v881_v45, %v880_v48 }
 0x109   : > { %v886_v50 = vpack.c.bf16 %v879_v47, %v878_v46  ;;  %v1331_v47 = vunpack.c.h.bf16 %v1340_v34 }
 0x10b   : > { %v1372_v49 = vpop.f32.mrf.mxu0  ;;  %1376 = vmatprep.mubr.msk.bf16.mxu1 %vm905_vm3, %v886_v50 }
 0x10c   : > { %1377 = vmatmul.mubr.msk.bf16.vlgmr.msra.gmra.mxu1 %vm905_vm3, %v887_v51  ;;  %v872_v56 = vadd.f32 %v1372_v49, %v1295_v38 }
 0x10d   : > { %v863_v52 = vpop.f32.mrf.mxu0  ;;  %1404 = vmatpush3.bf16.msra.mxu1 %v1436_v35 }
 0x10e   : > { %v864_v54 = vadd.f32 %v1295_v38, %v863_v52  ;;  %v884_v62 = vmax.f32 %v872_v56, 0.0  ;;  %1401 = vmatprep.subr.bf16.mxu1 %v1437_v1  ;;  %v1327_v52 = vunpack.c.h.bf16 %v1325_v36 }
 0x10f   : > { %v1373_v53 = vpop.f32.mrf.mxu0 }
 0x110   : > { %v875_v55 = vadd.f32 %v1373_v53, %v1295_v38  ;;  %v882_v60 = vmax.f32 %v864_v54, 0.0 }
 0x111   : > { %v866_v57 = vpop.f32.mrf.mxu0  ;;  %1405 = vmatpush3.bf16.msra.mxu1 %v1437_v1 }
 0x112   : > { %v867_v58 = vadd.f32 %v1295_v38, %v866_v57  ;;  %v885_v59 = vmax.f32 %v875_v55, 0.0  ;;  %1402 = vmatprep.subr.bf16.mxu1 %v1438_v2  ;;  %v1330_v38 = vunpack.c.l.bf16 %v1340_v34  ;;  %v1342_v55 = vld [vmem:[%s1725_s10 + $0x18] sm:$0xff]  }
 0x114   : > { %v883_v61 = vmax.f32 %v867_v58, 0.0  ;;  %v889_v0 = vpack.c.bf16 %v885_v59, %v884_v62  ;;  %v1341_v58 = vld [vmem:[%s1725_s10 + $0x10] sm:$0xff]  }
 0x115   : > { %1406 = vmatpush3.bf16.msra.mxu1 %v1438_v2 }
 0x116   : > { %v888_v63 = vpack.c.bf16 %v883_v61, %v882_v60  ;;  %1403 = vmatprep.subr.bf16.mxu1 %v1439_v3  ;;  %v1338_v60 = vunpack.c.l.bf16 %v1342_v55 }
 0x118   : > { %1380 = vmatprep.mubr.msk.bf16.mxu1 %vm905_vm3, %v888_v63 }
 0x119   : > { %1381 = vmatmul.mubr.msk.bf16.gmra.mxu1 %vm905_vm3, %v889_v0  ;;  %v1334_v0 = vunpack.c.l.bf16 %v1341_v58 }
 0x11a   : > { %1407 = vmatpush3.bf16.msra.mxu1 %v1439_v3 }
 0x1cc   : > { %v1378_v4 = vpop.f32.mrf.mxu1 }
 0x1cd   : > { %v961_v10 = vadd.f32 %v1378_v4, %v1306_v6 }
 0x1ce   : > { %v952_v5 = vpop.f32.mrf.mxu1 }
 0x1cf   : > { %v953_v8 = vadd.f32 %v1306_v6, %v952_v5  ;;  %v985_v16 = vmax.f32 %v961_v10, 0.0  ;;  %v1339_v5 = vunpack.c.h.bf16 %v1342_v55  ;;  %v1335_v10 = vunpack.c.h.bf16 %v1341_v58 }
 0x1d0   : > { %v1379_v7 = vpop.f32.mrf.mxu1 }
 0x1d1   : > { %v964_v9 = vadd.f32 %v1379_v7, %v1306_v6  ;;  %v983_v14 = vmax.f32 %v953_v8, 0.0 }
 0x1d2   : > { %v955_v11 = vpop.f32.mrf.mxu1 }
 0x1d3   : > { %v956_v12 = vadd.f32 %v1306_v6, %v955_v11  ;;  %v986_v13 = vmax.f32 %v964_v9, 0.0 }
 0x1d5   : > { %v984_v15 = vmax.f32 %v956_v12, 0.0  ;;  %v992_v19 = vpack.c.bf16 %v986_v13, %v985_v16 }
 0x1d7   : > { %v991_v17 = vpack.c.bf16 %v984_v15, %v983_v14 }
 0x1d9   : > { %v1382_v18 = vpop.f32.mrf.mxu1  ;;  %1392 = vmatprep.mubr.msk.bf16.mxu0 %vm1034_vm4, %v991_v17 }
 0x1da   : > { %1393 = vmatmul.mubr.msk.bf16.vlgmr.msra.gmra.mxu0 %vm1034_vm4, %v992_v19  ;;  %v977_v24 = vadd.f32 %v1382_v18, %v1306_v6 }
 0x1db   : > { %v968_v20 = vpop.f32.mrf.mxu1 }
 0x1dc   : > { %v969_v22 = vadd.f32 %v1306_v6, %v968_v20  ;;  %v989_v30 = vmax.f32 %v977_v24, 0.0 }
 0x1dd   : > { %v1383_v21 = vpop.f32.mrf.mxu1 }
 0x1de   : > { %v980_v23 = vadd.f32 %v1383_v21, %v1306_v6  ;;  %v987_v28 = vmax.f32 %v969_v22, 0.0 }
 0x1df   : > { %v971_v25 = vpop.f32.mrf.mxu1 }
 0x1e0   : > { %v972_v26 = vadd.f32 %v1306_v6, %v971_v25  ;;  %v990_v27 = vmax.f32 %v980_v23, 0.0 }
 0x1e2   : > { %v988_v29 = vmax.f32 %v972_v26, 0.0  ;;  %v994_v32 = vpack.c.bf16 %v990_v27, %v989_v30 }
 0x1e4   : > { %v993_v31 = vpack.c.bf16 %v988_v29, %v987_v28 }
 0x1e6   : > { %1396 = vmatprep.mubr.msk.bf16.mxu1 %vm1034_vm4, %v993_v31 }
 0x1e7   : > { %1397 = vmatmul.mubr.msk.bf16.vlgmr.msra.gmra.mxu1 %vm1034_vm4, %v994_v32 }
 0x29a   : > { %v1394_v35 = vpop.f32.mrf.mxu0 }
 0x29b   : > { %v1090_v37 = vadd.f32 %v1394_v35, %v1312_v33 }
 0x29c   : > { %v1081_v39 = vpop.f32.mrf.mxu0 }
 0x29d   : > { %v1114_v40 = vmax.f32 %v1090_v37, 0.0  ;;  %v1082_v41 = vadd.f32 %v1312_v33, %v1081_v39 }
 0x29e   : > { %v1395_v43 = vpop.f32.mrf.mxu0 }
 0x29f   : > { %v1138_v44 = vadd.f32 %v1330_v38, %v1114_v40  ;;  %v1112_v45 = vmax.f32 %v1082_v41, 0.0  ;;  %v1093_v46 = vadd.f32 %v1395_v43, %v1312_v33 }
 0x2a0   : > { %v1084_v48 = vpop.f32.mrf.mxu0 }
 0x2a1   : > { %1146 = vst.msk [vmem:[%s1735_s15 + $0x10] sm:$0xff] %vm905_vm3, %v1138_v44  ;;  %v1136_v49 = vadd.f32 %v1326_v42, %v1112_v45  ;;  %v1115_v50 = vmax.f32 %v1093_v46, 0.0  ;;  %v1085_v51 = vadd.f32 %v1312_v33, %v1084_v48 }
 0x2a3   : > { %1144 = vst.msk [vmem:[%s1735_s15] sm:$0xff] %vm905_vm3, %v1136_v49  ;;  %v1139_v53 = vadd.f32 %v1331_v47, %v1115_v50  ;;  %v1113_v54 = vmax.f32 %v1085_v51, 0.0 }
 0x2a5   : > { %1147 = vst.msk [vmem:[%s1735_s15 + $0x18] sm:$0xff] %vm905_vm3, %v1139_v53  ;;  %v1137_v56 = vadd.f32 %v1327_v52, %v1113_v54 }
 0x2a7   : > { %v1398_v57 = vpop.f32.mrf.mxu1  ;;  %1145 = vst.msk [vmem:[%s1735_s15 + $0x8] sm:$0xff] %vm905_vm3, %v1137_v56 }
 0x2a8   : > { %v1106_v59 = vadd.f32 %v1398_v57, %v1312_v33 }
 0x2a9   : > { %v1097_v61 = vpop.f32.mrf.mxu1 }
 0x2aa   : > { %v1118_v62 = vmax.f32 %v1106_v59, 0.0  ;;  %v1098_v63 = vadd.f32 %v1312_v33, %v1097_v61 }
 0x2ab   : > { %v1399_v1 = vpop.f32.mrf.mxu1 }
 0x2ac   : > { %v1142_v2 = vadd.f32 %v1338_v60, %v1118_v62  ;;  %v1116_v3 = vmax.f32 %v1098_v63, 0.0  ;;  %v1109_v4 = vadd.f32 %v1399_v1, %v1312_v33 }
 0x2ad   : > { %v1100_v6 = vpop.f32.mrf.mxu1 }
 0x2ae   : > { %1150 = vst.msk [vmem:[%s1735_s15 + $0x30] sm:$0xff] %vm905_vm3, %v1142_v2  ;;  %v1140_v7 = vadd.f32 %v1334_v0, %v1116_v3  ;;  %v1119_v8 = vmax.f32 %v1109_v4, 0.0  ;;  %v1101_v9 = vadd.f32 %v1312_v33, %v1100_v6 }
 0x2b0   : > { %1148 = vst.msk [vmem:[%s1735_s15 + $0x20] sm:$0xff] %vm905_vm3, %v1140_v7  ;;  %v1143_v11 = vadd.f32 %v1339_v5, %v1119_v8  ;;  %v1117_v12 = vmax.f32 %v1101_v9, 0.0 }
 0x2b2   : > { %1151 = vst.msk [vmem:[%s1735_s15 + $0x38] sm:$0xff] %vm905_vm3, %v1143_v11  ;;  %v1141_v13 = vadd.f32 %v1335_v10, %v1117_v12 }
 0x2b4   : > { %1149 = vst.msk [vmem:[%s1735_s15 + $0x28] sm:$0xff] %vm905_vm3, %v1141_v13 }
 0x2b5 PF: > { %p15_p9 = scmp.ge.s32.totalorder %s1527_s9, 4   ;;  %s1774_s27 = smov %s1458_s28 }
 0x2b6   : > { %s1775_s28 = smov %s1536_s12  ;;  %s1776_s29 = smov %s1527_s9 }
 0x2b7   :  { %17 = sbr.rel (!%p15_p9) target bundleno = 2 (0x2), region = 138 }

// kernel: tpu_custom_call.1
= control target key start
LH: loop header
LB: loop body
LE: loop exit
PB: predicated region body
PF: predicated region fallthrough
CT: control target
= control target key end

     0   :  { %s1510_s27 = smov 0   ;;  %s1512_s28 = smov 0   ;;  %s1765_s0 = inlined_call_operand.vmem [shape: bf16[8,128,19], index: 0, kind: input, shape index: {}]   ;;  %s1766_s1 = inlined_call_operand.vmem [shape: bf16[128,16], index: 1, kind: input, shape index: {}]   ;;  %s1767_s2 = inlined_call_operand.vmem [shape: bf16[19,16], index: 2, kind: input, shape index: {}]   ;;  %s1768_s3 = inlined_call_operand.vmem [shape: f32[1,16], index: 3, kind: input, shape index: {}]   ;;  %s1769_s4 = inlined_call_operand.vmem [shape: bf16[16,64], index: 4, kind: input, shape index: {}]   ;;  %s1770_s5 = inlined_call_operand.vmem [shape: f32[1,64], index: 5, kind: input, shape index: {}]   ;;  %s1771_s6 = inlined_call_operand.vmem [shape: bf16[64,16], index: 6, kind: input, shape index: {}]   ;;  %s1772_s7 = inlined_call_operand.vmem [shape: f32[1,16], index: 7, kind: input, shape index: {}]   ;;  %s1773_s8 = inlined_call_operand.vmem [shape: f32[128,16], index: 8, kind: output, shape index: {}]  }
   0x1   :  { %s1514_s29 = smov 0  }
   0x2 LB: > { %s1226_s30 = sadd.s32 4294967295, %s1462_s29   ;;  %s1527_s9 = sadd.s32 1, %s1462_s29   ;;  %s1462_s29 = sphi %s1514_s29, %s1776_s29   ;;  %s1458_s28 = sphi %s1512_s28, %s1775_s28   ;;  %s1454_s27 = sphi %s1510_s27, %s1774_s27  }
   0x3   : > { %s22_s10 = ssub.s32 %s1462_s29, %s1527_s9  ;;  %s25_s11 = sadd.s32 1, %s1458_s28 }
   0x4   : > { %p23_p0 = scmp.eq.s32.totalorder %s22_s10, 0  ;;  %p32_p1 = scmp.ne.s32.totalorder %s1458_s28, %s1454_s27 }
   0x5   : > { %p33_p2 = scmp.eq.s32.totalorder %s1462_s29, 0  ;;  %p1229_p4 = scmp.ge.s32.totalorder %s1462_s29, 2 }
   0x6   : > { %s1536_s12 = scalar_select %p23_p0, %s1458_s28, %s25_s11  }
   0x7   : > { %p34_p3 = por %p33_p2, %p32_p1  ;;  %254 = sbr.rel (%p1229_p4) target bundleno = 32 (0x20), region = 40 }
   0xc   : > { %257 = sbr.rel (!%p34_p3) target bundleno = 32 (0x20), region = 44  ;;  %s259_s13 = sand.u32 (%p34_p3), 1, %s1458_s28  }
   0xd   : > { %s1323_s14 = sshll.u32 (%p34_p3), %s1462_s29, 5  ;;  %s1230_s15 = sshll.u32 (%p34_p3), %s259_s13, 8 }
   0xe   : > { %s1544_s18 = scalar_lea.vmem (%p34_p3), %s1765_s0, %s1323_s14  ;;  %s1549_s19 = scalar_lea.vmem (%p34_p3), [#allocation2], %s1230_s15 }
   0xf   : > { %v281_v0 = vld [vmem:[%s1544_s18] sm:$0xff] (%p34_p3)   ;;  %v285_v1 = vld [vmem:[%s1544_s18 + $0x8] sm:$0xff] (%p34_p3)   ;;  %v289_v2 = vld [vmem:[%s1544_s18 + $0x10] sm:$0xff] (%p34_p3)  }
  0x10   : > { %282 = vst [vmem:[%s1549_s19] sm:$0xff] (%p34_p3), %v281_v0   ;;  %286 = vst [vmem:[%s1549_s19 + $0x8] sm:$0xff] (%p34_p3), %v285_v1   ;;  %v293_v3 = vld [vmem:[%s1544_s18 + $0x18] sm:$0xff] (%p34_p3)   ;;  %v297_v4 = vld [vmem:[%s1544_s18 + $0x40] sm:$0xff] (%p34_p3)  }
  0x11   : > { %290 = vst [vmem:[%s1549_s19 + $0x10] sm:$0xff] %v289_v2   ;;  %v301_v5 = vld [vmem:[%s1544_s18 + $0x48] sm:$0xff]   ;;  %294 = vst [vmem:[%s1549_s19 + $0x18] sm:$0xff] %v293_v3   ;;  %v305_v6 = vld [vmem:[%s1544_s18 + $0x50] sm:$0xff]  }
  0x12   : > { %298 = vst [vmem:[%s1549_s19 + $0x20] sm:$0xff] %v297_v4   ;;  %302 = vst [vmem:[%s1549_s19 + $0x28] sm:$0xff] %v301_v5   ;;  %v309_v7 = vld [vmem:[%s1544_s18 + $0x58] sm:$0xff]   ;;  %v313_v8 = vld [vmem:[%s1544_s18 + $0x80] sm:$0xff]  }
  0x13   : > { %306 = vst [vmem:[%s1549_s19 + $0x30] sm:$0xff] %v305_v6   ;;  %310 = vst [vmem:[%s1549_s19 + $0x38] sm:$0xff] %v309_v7   ;;  %v317_v9 = vld [vmem:[%s1544_s18 + $0x88] sm:$0xff]   ;;  %v321_v10 = vld [vmem:[%s1544_s18 + $0x90] sm:$0xff]  }
  0x14   : > { %314 = vst [vmem:[%s1549_s19 + $0x40] sm:$0xff] %v313_v8   ;;  %v325_v11 = vld [vmem:[%s1544_s18 + $0x98] sm:$0xff]   ;;  %318 = vst [vmem:[%s1549_s19 + $0x48] sm:$0xff] %v317_v9   ;;  %v329_v12 = vld [vmem:[%s1544_s18 + $0xc0] sm:$0xff]  }
  0x15   : > { %322 = vst [vmem:[%s1549_s19 + $0x50] sm:$0xff] %v321_v10   ;;  %326 = vst [vmem:[%s1549_s19 + $0x58] sm:$0xff] %v325_v11   ;;  %v333_v13 = vld [vmem:[%s1544_s18 + $0xc8] sm:$0xff]   ;;  %v337_v14 = vld [vmem:[%s1544_s18 + $0xd0] sm:$0xff]  }
  0x16   : > { %330 = vst [vmem:[%s1549_s19 + $0x60] sm:$0xff] %v329_v12   ;;  %334 = vst [vmem:[%s1549_s19 + $0x68] sm:$0xff] %v333_v13   ;;  %v341_v15 = vld [vmem:[%s1544_s18 + $0xd8] sm:$0xff]   ;;  %v345_v16 = vld [vmem:[%s1544_s18 + $0x100] sm:$0xff]  }
  0x17   : > { %338 = vst [vmem:[%s1549_s19 + $0x70] sm:$0xff] %v337_v14   ;;  %v349_v17 = vld [vmem:[%s1544_s18 + $0x108] sm:$0xff]   ;;  %342 = vst [vmem:[%s1549_s19 + $0x78] sm:$0xff] %v341_v15   ;;  %v353_v18 = vld [vmem:[%s1544_s18 + $0x110] sm:$0xff]  }
  0x18   : > { %346 = vst [vmem:[%s1549_s19 + $0x80] sm:$0xff] %v345_v16   ;;  %350 = vst [vmem:[%s1549_s19 + $0x88] sm:$0xff] %v349_v17   ;;  %v357_v19 = vld [vmem:[%s1544_s18 + $0x118] sm:$0xff]   ;;  %v361_v20 = vld [vmem:[%s1544_s18 + $0x140] sm:$0xff]  }
  0x19   : > { %354 = vst [vmem:[%s1549_s19 + $0x90] sm:$0xff] %v353_v18   ;;  %358 = vst [vmem:[%s1549_s19 + $0x98] sm:$0xff] %v357_v19   ;;  %v365_v21 = vld [vmem:[%s1544_s18 + $0x148] sm:$0xff]   ;;  %v369_v22 = vld [vmem:[%s1544_s18 + $0x150] sm:$0xff]  }
  0x1a   : > { %362 = vst [vmem:[%s1549_s19 + $0xa0] sm:$0xff] %v361_v20   ;;  %v373_v23 = vld [vmem:[%s1544_s18 + $0x158] sm:$0xff]   ;;  %366 = vst [vmem:[%s1549_s19 + $0xa8] sm:$0xff] %v365_v21   ;;  %v377_v24 = vld [vmem:[%s1544_s18 + $0x180] sm:$0xff]  }
  0x1b   : > { %370 = vst [vmem:[%s1549_s19 + $0xb0] sm:$0xff] %v369_v22   ;;  %374 = vst [vmem:[%s1549_s19 + $0xb8] sm:$0xff] %v373_v23   ;;  %v381_v25 = vld [vmem:[%s1544_s18 + $0x188] sm:$0xff]   ;;  %v385_v26 = vld [vmem:[%s1544_s18 + $0x190] sm:$0xff]  }
  0x1c   : > { %378 = vst [vmem:[%s1549_s19 + $0xc0] sm:$0xff] %v377_v24   ;;  %382 = vst [vmem:[%s1549_s19 + $0xc8] sm:$0xff] %v381_v25   ;;  %v389_v27 = vld [vmem:[%s1544_s18 + $0x198] sm:$0xff]   ;;  %v393_v28 = vld [vmem:[%s1544_s18 + $0x1c0] sm:$0xff]  }
  0x1d   : > { %386 = vst [vmem:[%s1549_s19 + $0xd0] sm:$0xff] %v385_v26   ;;  %v397_v29 = vld [vmem:[%s1544_s18 + $0x1c8] sm:$0xff]   ;;  %390 = vst [vmem:[%s1549_s19 + $0xd8] sm:$0xff] %v389_v27   ;;  %v401_v30 = vld [vmem:[%s1544_s18 + $0x1d0] sm:$0xff]  }
  0x1e   : > { %394 = vst [vmem:[%s1549_s19 + $0xe0] sm:$0xff] %v393_v28   ;;  %398 = vst [vmem:[%s1549_s19 + $0xe8] sm:$0xff] %v397_v29   ;;  %v405_v31 = vld [vmem:[%s1544_s18 + $0x1d8] sm:$0xff]  }
  0x1f   : > { %402 = vst [vmem:[%s1549_s19 + $0xf0] sm:$0xff] %v401_v30   ;;  %406 = vst [vmem:[%s1549_s19 + $0xf8] sm:$0xff] %v405_v31  }
  0x20 PF: > { %p1233_p5 = scmp.ge.s32.totalorder %s1462_s29, 1  ;;  %p568_p6 = scmp.lt.s32.totalorder %s1462_s29, 3 }
  0x22   : > { %p569_p7 = pnand %p1233_p5, %p568_p6 }
  0x23   : > { %s575_s22 = sand.u32 (!%p569_p7), 1, %s1454_s27   ;;  %s1235_s24 = sshll.u32 (!%p569_p7), %s1226_s30, 3 }
  0x24   : > { %572 = sbr.rel (%p569_p7) target bundleno = 693 (0x2b5), region = 89  ;;  %s1234_s23 = sshll.u32 (!%p569_p7), %s575_s22, 8 }
  0x25   : > { %s1621_s26 = scalar_lea.vmem (!%p569_p7), [#allocation2], %s1234_s23  ;;  %p615_p8 = scmp.lt.s32.totalorder (!%p569_p7), %s1235_s24, 15 }
  0x29   : > { %v1433_v32 = vld [vmem:[%s1767_s2 + $0x8] ss:$0 sps:$4 sm:$0x33]   ;;  %vm806_vm0 = vcmask 1040384   ;;  %vm807_vm1 = vcmask 1041408   ;;  %v1464_v33 = vmov 65535  }
  0x2a   : > { %v808_v34 = vsel %vm806_vm0, 4294967295, %v1464_v33  ;;  %v1434_v37 = vld [vmem:[%s1767_s2] sm:$0xff]   ;;  %v629_v55 = vld [vmem:[%s1621_s26 + $0x8] sm:$0xf]  ;;  %v630_v56 = vld [vmem:[%s1621_s26 + $0xc] sm:$0xf] }
  0x2b   : > { %v809_v35 = vsel %vm807_vm1, %v808_v34, 0  ;;  %v627_v38 = vld [vmem:[%s1621_s26] sm:$0xf]  ;;  %v628_v39 = vld [vmem:[%s1621_s26 + $0x4] sm:$0xf]  ;;  %vm793_vm2 = vcmask 154624  }
  0x2c   : > { %v811_v36 = vand.u32 %v1433_v32, %v809_v35  ;;  %v1239_v40 = vld [vmem:[%s1621_s26 + $0x20] sm:$0xf]  ;;  %v1240_v41 = vld [vmem:[%s1621_s26 + $0x24] sm:$0xf]  ;;  %v1241_v58 = vld [vmem:[%s1621_s26 + $0x28] sm:$0xf] }
  0x2d   : > { %v644_v42 = vmax.bf16 %v1239_v40, %v627_v38  ;;  %v1247_v43 = vld [vmem:[%s1621_s26 + $0x40] sm:$0xf]  ;;  %v1248_v44 = vld [vmem:[%s1621_s26 + $0x44] sm:$0xf]  ;;  %v645_v45 = vmax.bf16 %v1240_v41, %v628_v39  ;;  %v1242_v59 = vld [vmem:[%s1621_s26 + $0x2c] sm:$0xf]  ;;  %v646_v0 = vmax.bf16 %v1241_v58, %v629_v55 }
  0x2e   : > { %1362 = vmatprep.subr.bf16.mxu0 %v811_v36  ;;  %v1255_v46 = vld [vmem:[%s1621_s26 + $0x60] sm:$0xf]  ;;  %v1256_v48 = vld [vmem:[%s1621_s26 + $0x64] sm:$0xf]  ;;  %v1249_v60 = vld [vmem:[%s1621_s26 + $0x48] sm:$0xf]  ;;  %v647_v1 = vmax.bf16 %v1242_v59, %v630_v56 }
  0x2f   : > { %1363 = vmatpush3.bf16.msra.mxu0 %v811_v36  ;;  %v661_v47 = vmax.bf16 %v1247_v43, %v644_v42  ;;  %v662_v49 = vmax.bf16 %v1248_v44, %v645_v45  ;;  %v1263_v50 = vld [vmem:[%s1621_s26 + $0x80] sm:$0xf]  ;;  %v1264_v51 = vld [vmem:[%s1621_s26 + $0x84] sm:$0xf]  ;;  %v1250_v2 = vld [vmem:[%s1621_s26 + $0x4c] sm:$0xf]  ;;  %v663_v9 = vmax.bf16 %v1249_v60, %v646_v0 }
  0x30   : > { %1364 = vmatprep.subr.bf16.mxu0 %v1434_v37  ;;  %v1271_v52 = vld [vmem:[%s1621_s26 + $0xa0] sm:$0xf]  ;;  %v1272_v54 = vld [vmem:[%s1621_s26 + $0xa4] sm:$0xf]  ;;  %v1257_v5 = vld [vmem:[%s1621_s26 + $0x68] sm:$0xf]  ;;  %v664_v10 = vmax.bf16 %v1250_v2, %v647_v1 }
  0x31   : > { %v678_v53 = vmax.bf16 %v1255_v46, %v661_v47  ;;  %v679_v57 = vmax.bf16 %v1256_v48, %v662_v49  ;;  %v1279_v62 = vld [vmem:[%s1621_s26 + $0xc0] sm:$0xf]  ;;  %v1280_v63 = vld [vmem:[%s1621_s26 + $0xc4] sm:$0xf]  ;;  %v1258_v6 = vld [vmem:[%s1621_s26 + $0x6c] sm:$0xf]  ;;  %v680_v18 = vmax.bf16 %v1257_v5, %v663_v9 }
  0x32   : > { %v1287_v4 = vld [vmem:[%s1621_s26 + $0xe0] sm:$0xf]  ;;  %v1288_v8 = vld [vmem:[%s1621_s26 + $0xe4] sm:$0xf]  ;;  %v1265_v11 = vld [vmem:[%s1621_s26 + $0x88] sm:$0xf]  ;;  %v681_v19 = vmax.bf16 %v1258_v6, %v664_v10 }
  0x33   : > { %1365 = vmatpush3.bf16.msra.mxu0 %v1434_v37  ;;  %v695_v61 = vmax.bf16 %v1263_v50, %v678_v53  ;;  %v696_v3 = vmax.bf16 %v1264_v51, %v679_v57  ;;  %v1266_v12 = vld [vmem:[%s1621_s26 + $0x8c] sm:$0xf]  ;;  %v1273_v14 = vld [vmem:[%s1621_s26 + $0xa8] sm:$0xf]  ;;  %v631_v16 = vld [vmem:[%s1621_s26 + $0x10] sm:$0xf]  ;;  %v697_v30 = vmax.bf16 %v1265_v11, %v680_v18 }
  0x34   : > { %v1274_v15 = vld [vmem:[%s1621_s26 + $0xac] sm:$0xf]  ;;  %v632_v20 = vld [vmem:[%s1621_s26 + $0x14] sm:$0xf]  ;;  %v1243_v21 = vld [vmem:[%s1621_s26 + $0x30] sm:$0xf]  ;;  %v698_v31 = vmax.bf16 %v1266_v12, %v681_v19 }
  0x35   : > { %v712_v7 = vmax.bf16 %v1271_v52, %v695_v61  ;;  %v713_v13 = vmax.bf16 %v1272_v54, %v696_v3  ;;  %v1244_v22 = vld [vmem:[%s1621_s26 + $0x34] sm:$0xf]  ;;  %v1281_v24 = vld [vmem:[%s1621_s26 + $0xc8] sm:$0xf]  ;;  %v648_v25 = vmax.bf16 %v1243_v21, %v631_v16  ;;  %v1251_v27 = vld [vmem:[%s1621_s26 + $0x50] sm:$0xf]  ;;  %v714_v41 = vmax.bf16 %v1273_v14, %v697_v30 }
  0x36   : > { %v649_v26 = vmax.bf16 %v1244_v22, %v632_v20  ;;  %v1252_v28 = vld [vmem:[%s1621_s26 + $0x54] sm:$0xf]  ;;  %v1282_v32 = vld [vmem:[%s1621_s26 + $0xcc] sm:$0xf]  ;;  %v1259_v33 = vld [vmem:[%s1621_s26 + $0x70] sm:$0xf]  ;;  %v715_v42 = vmax.bf16 %v1274_v15, %v698_v31 }
  0x37   : > { %v729_v17 = vmax.bf16 %v1279_v62, %v712_v7  ;;  %v730_v23 = vmax.bf16 %v1280_v63, %v713_v13  ;;  %v1260_v34 = vld [vmem:[%s1621_s26 + $0x74] sm:$0xf]  ;;  %v1289_v36 = vld [vmem:[%s1621_s26 + $0xe8] sm:$0xf]  ;;  %v1290_v37 = vld [vmem:[%s1621_s26 + $0xec] sm:$0xf]  ;;  %v665_v38 = vmax.bf16 %v1251_v27, %v648_v25  ;;  %v731_v52 = vmax.bf16 %v1281_v24, %v714_v41 }
  0x38   : > { %v666_v39 = vmax.bf16 %v1252_v28, %v649_v26  ;;  %v1267_v40 = vld [vmem:[%s1621_s26 + $0x90] sm:$0xf]  ;;  %v1268_v43 = vld [vmem:[%s1621_s26 + $0x94] sm:$0xf]  ;;  %v633_v49 = vld [vmem:[%s1621_s26 + $0x18] sm:$0xf]  ;;  %v732_v53 = vmax.bf16 %v1282_v32, %v715_v42 }
  0x39   : > { %v746_v29 = vmax.bf16 %v1287_v4, %v729_v17  ;;  %v747_v35 = vmax.bf16 %v1288_v8, %v730_v23  ;;  %v1275_v44 = vld [vmem:[%s1621_s26 + $0xb0] sm:$0xf]  ;;  %v1276_v45 = vld [vmem:[%s1621_s26 + $0xb4] sm:$0xf]  ;;  %v682_v47 = vmax.bf16 %v1259_v33, %v665_v38  ;;  %v634_v50 = vld [vmem:[%s1621_s26 + $0x1c] sm:$0xf]  ;;  %v748_v63 = vmax.bf16 %v1289_v36, %v731_v52 }
  0x3a   : > { %v683_v48 = vmax.bf16 %v1260_v34, %v666_v39  ;;  %v1245_v51 = vld [vmem:[%s1621_s26 + $0x38] sm:$0xf]  ;;  %v1246_v54 = vld [vmem:[%s1621_s26 + $0x3c] sm:$0xf]  ;;  %v1283_v60 = vld [vmem:[%s1621_s26 + $0xd0] sm:$0xf]  ;;  %v749_v0 = vmax.bf16 %v1290_v37, %v732_v53 }
  0x3b   : > { %v1296_v46 = vcombine.low %v746_v29, %v747_v35  ;;  %v650_v55 = vmax.bf16 %v1245_v51, %v633_v49  ;;  %v1253_v56 = vld [vmem:[%s1621_s26 + $0x58] sm:$0xf]  ;;  %v1254_v57 = vld [vmem:[%s1621_s26 + $0x5c] sm:$0xf]  ;;  %v699_v58 = vmax.bf16 %v1267_v40, %v682_v47  ;;  %v651_v61 = vmax.bf16 %v1246_v54, %v634_v50  ;;  %v1284_v1 = vld [vmem:[%s1621_s26 + $0xd4] sm:$0xf] }
  0x3c   : > { %v700_v59 = vmax.bf16 %v1268_v43, %v683_v48  ;;  %v1261_v62 = vld [vmem:[%s1621_s26 + $0x78] sm:$0xf]  ;;  %v1291_v2 = vld [vmem:[%s1621_s26 + $0xf0] sm:$0xf]  ;;  %v1262_v4 = vld [vmem:[%s1621_s26 + $0x7c] sm:$0xf]  ;;  %v1297_v11 = vcombine.low %v748_v63, %v749_v0 }
  0x3d   : > { %1366 = vmatprep.mubr.msk.bf16.mxu0 %vm793_vm2, %v1296_v46  ;;  %v667_v3 = vmax.bf16 %v1253_v56, %v650_v55  ;;  %v716_v5 = vmax.bf16 %v1275_v44, %v699_v58  ;;  %v1292_v7 = vld [vmem:[%s1621_s26 + $0xf4] sm:$0xf]  ;;  %v668_v8 = vmax.bf16 %v1254_v57, %v651_v61  ;;  %v1269_v9 = vld [vmem:[%s1621_s26 + $0x98] sm:$0xf]  ;;  %v1270_v10 = vld [vmem:[%s1621_s26 + $0x9c] sm:$0xf] }
  0x3e   : > { %v717_v6 = vmax.bf16 %v1276_v45, %v700_v59  ;;  %v1277_v13 = vld [vmem:[%s1621_s26 + $0xb8] sm:$0xf]  ;;  %1367 = vmatmul.mubr.msk.bf16.vlgmr.msra.gmra.mxu0 %vm793_vm2, %v1297_v11  ;;  %v1278_v18 = vld [vmem:[%s1621_s26 + $0xbc] sm:$0xf]  ;;  %v1435_v34 = vld [vmem:[%s1769_s4] sm:$0xff]   ;;  %vm905_vm3 = vcmask 130048  }
  0x3f   : > { %v684_v12 = vmax.bf16 %v1261_v62, %v667_v3  ;;  %v733_v14 = vmax.bf16 %v1283_v60, %v716_v5  ;;  %v685_v16 = vmax.bf16 %v1262_v4, %v668_v8  ;;  %v1285_v22 = vld [vmem:[%s1621_s26 + $0xd8] sm:$0xf]  ;;  %v1286_v24 = vld [vmem:[%s1621_s26 + $0xdc] sm:$0xf]  ;;  %1374 = vmatprep.subr.bf16.mxu1 %v1435_v34  ;;  %v1295_v38 = vld [vmem:[%s1768_s3] ss:$0 sm:$0xff] }
  0x40   : > { %v734_v15 = vmax.bf16 %v1284_v1, %v717_v6  ;;  %v1293_v27 = vld [vmem:[%s1621_s26 + $0xf8] sm:$0xf]  ;;  %v1294_v29 = vld [vmem:[%s1621_s26 + $0xfc] sm:$0xf]  ;;  %1375 = vmatpush3.bf16.msra.mxu1 %v1435_v34  ;;  %v1437_v1 = vld [vmem:[%s1771_s6 + $0x10] sm:$0xff]   ;;  %vm1034_vm4 = vcmask 523264  }
  0x41   : > { %v701_v17 = vmax.bf16 %v1269_v9, %v684_v12  ;;  %v750_v19 = vmax.bf16 %v1291_v2, %v733_v14  ;;  %v702_v21 = vmax.bf16 %v1270_v10, %v685_v16  ;;  %v1436_v35 = vld [vmem:[%s1771_s6 + $0x18] sm:$0xff]   ;;  %v1438_v2 = vld [vmem:[%s1771_s6 + $0x8] sm:$0xff]   ;;  %v1439_v3 = vld [vmem:[%s1771_s6] sm:$0xff]   ;;  %s1778_s24 = smov (!%p615_p8, %s1235_s24), 15 }
  0x42   : > { %v751_v20 = vmax.bf16 %v1292_v7, %v734_v15  ;;  %1384 = vmatprep.subr.bf16.mxu0 %v1436_v35  ;;  %1400 = vmatprep.subr.bf16.mxu1 %v1436_v35  ;;  %v1306_v6 = vld [vmem:[%s1770_s5] ss:$0 sm:$0xff]  ;;  %s1236_s25 = sshll.u32 %s1778_s24, 2  ;;  %s1238_s14 = sshll.u32 %s1778_s24, 3 }
  0x43   : > { %v718_v23 = vmax.bf16 %v1277_v13, %v701_v17  ;;  %v719_v26 = vmax.bf16 %v1278_v18, %v702_v21  ;;  %1385 = vmatpush3.bf16.msra.mxu0 %v1436_v35  ;;  %s1725_s10 = scalar_lea.vmem %s1766_s1, %s1236_s25  ;;  %s1735_s15 = scalar_lea.vmem %s1773_s8, %s1238_s14 }
  0x44   : > { %v1298_v25 = vcombine.low %v750_v19, %v751_v20  ;;  %1386 = vmatprep.subr.bf16.mxu0 %v1437_v1  ;;  %v1340_v34 = vld [vmem:[%s1725_s10 + $0x8] sm:$0xff]  }
  0x45   : > { %v735_v28 = vmax.bf16 %v1285_v22, %v718_v23  ;;  %v736_v30 = vmax.bf16 %v1286_v24, %v719_v26 }
  0x46   : > { %1370 = vmatprep.mubr.msk.bf16.mxu0 %vm793_vm2, %v1298_v25 }
  0x47   : > { %v752_v31 = vmax.bf16 %v1293_v27, %v735_v28  ;;  %v753_v32 = vmax.bf16 %v1294_v29, %v736_v30  ;;  %1387 = vmatpush3.bf16.msra.mxu0 %v1437_v1 }
  0x48   : > { %1388 = vmatprep.subr.bf16.mxu0 %v1438_v2 }
  0x49   : > { %v1299_v33 = vcombine.low %v752_v31, %v753_v32 }
  0x4b   : > { %1371 = vmatmul.mubr.msk.bf16.gmra.mxu0 %vm793_vm2, %v1299_v33  ;;  %v1312_v33 = vld [vmem:[%s1772_s7] ss:$0 sm:$0xff] }
  0x4c   : > { %1389 = vmatpush3.bf16.msra.mxu0 %v1438_v2 }
  0x4d   : > { %1390 = vmatprep.subr.bf16.mxu0 %v1439_v3 }
  0x50   : > { %1391 = vmatpush3.bf16.msra.mxu0 %v1439_v3 }
  0xfe   : > { %v1368_v36 = vpop.f32.mrf.mxu0 }
  0xff   : > { %v856_v42 = vadd.f32 %v1368_v36, %v1295_v38  ;;  %v1325_v36 = vld [vmem:[%s1725_s10] sm:$0xff]  }
 0x100   : > { %v847_v37 = vpop.f32.mrf.mxu0 }
 0x101   : > { %v848_v40 = vadd.f32 %v1295_v38, %v847_v37  ;;  %v880_v48 = vmax.f32 %v856_v42, 0.0  ;;  %v1326_v42 = vunpack.c.l.bf16 %v1325_v36 }
 0x102   : > { %v1369_v39 = vpop.f32.mrf.mxu0 }
 0x103   : > { %v859_v41 = vadd.f32 %v1369_v39, %v1295_v38  ;;  %v878_v46 = vmax.f32 %v848_v40, 0.0 }
 0x104   : > { %v850_v43 = vpop.f32.mrf.mxu0 }
 0x105   : > { %v851_v44 = vadd.f32 %v1295_v38, %v850_v43  ;;  %v881_v45 = vmax.f32 %v859_v41, 0.0 }
 0x107   : > { %v879_v47 = vmax.f32 %v851_v44, 0.0  ;;  %v887_v51 = vpack.c.bf16 %v881_v45, %v880_v48 }
 0x109   : > { %v886_v50 = vpack.c.bf16 %v879_v47, %v878_v46  ;;  %v1331_v47 = vunpack.c.h.bf16 %v1340_v34 }
 0x10b   : > { %v1372_v49 = vpop.f32.mrf.mxu0  ;;  %1376 = vmatprep.mubr.msk.bf16.mxu1 %vm905_vm3, %v886_v50 }
 0x10c   : > { %1377 = vmatmul.mubr.msk.bf16.vlgmr.msra.gmra.mxu1 %vm905_vm3, %v887_v51  ;;  %v872_v56 = vadd.f32 %v1372_v49, %v1295_v38 }
 0x10d   : > { %v863_v52 = vpop.f32.mrf.mxu0  ;;  %1404 = vmatpush3.bf16.msra.mxu1 %v1436_v35 }
 0x10e   : > { %v864_v54 = vadd.f32 %v1295_v38, %v863_v52  ;;  %v884_v62 = vmax.f32 %v872_v56, 0.0  ;;  %1401 = vmatprep.subr.bf16.mxu1 %v1437_v1  ;;  %v1327_v52 = vunpack.c.h.bf16 %v1325_v36 }
 0x10f   : > { %v1373_v53 = vpop.f32.mrf.mxu0 }
 0x110   : > { %v875_v55 = vadd.f32 %v1373_v53, %v1295_v38  ;;  %v882_v60 = vmax.f32 %v864_v54, 0.0 }
 0x111   : > { %v866_v57 = vpop.f32.mrf.mxu0  ;;  %1405 = vmatpush3.bf16.msra.mxu1 %v1437_v1 }
 0x112   : > { %v867_v58 = vadd.f32 %v1295_v38, %v866_v57  ;;  %v885_v59 = vmax.f32 %v875_v55, 0.0  ;;  %1402 = vmatprep.subr.bf16.mxu1 %v1438_v2  ;;  %v1330_v38 = vunpack.c.l.bf16 %v1340_v34  ;;  %v1342_v55 = vld [vmem:[%s1725_s10 + $0x18] sm:$0xff]  }
 0x114   : > { %v883_v61 = vmax.f32 %v867_v58, 0.0  ;;  %v889_v0 = vpack.c.bf16 %v885_v59, %v884_v62  ;;  %v1341_v58 = vld [vmem:[%s1725_s10 + $0x10] sm:$0xff]  }
 0x115   : > { %1406 = vmatpush3.bf16.msra.mxu1 %v1438_v2 }
 0x116   : > { %v888_v63 = vpack.c.bf16 %v883_v61, %v882_v60  ;;  %1403 = vmatprep.subr.bf16.mxu1 %v1439_v3  ;;  %v1338_v60 = vunpack.c.l.bf16 %v1342_v55 }
 0x118   : > { %1380 = vmatprep.mubr.msk.bf16.mxu1 %vm905_vm3, %v888_v63 }
 0x119   : > { %1381 = vmatmul.mubr.msk.bf16.gmra.mxu1 %vm905_vm3, %v889_v0  ;;  %v1334_v0 = vunpack.c.l.bf16 %v1341_v58 }
 0x11a   : > { %1407 = vmatpush3.bf16.msra.mxu1 %v1439_v3 }
 0x1cc   : > { %v1378_v4 = vpop.f32.mrf.mxu1 }
 0x1cd   : > { %v961_v10 = vadd.f32 %v1378_v4, %v1306_v6 }
 0x1ce   : > { %v952_v5 = vpop.f32.mrf.mxu1 }
 0x1cf   : > { %v953_v8 = vadd.f32 %v1306_v6, %v952_v5  ;;  %v985_v16 = vmax.f32 %v961_v10, 0.0  ;;  %v1339_v5 = vunpack.c.h.bf16 %v1342_v55  ;;  %v1335_v10 = vunpack.c.h.bf16 %v1341_v58 }
 0x1d0   : > { %v1379_v7 = vpop.f32.mrf.mxu1 }
 0x1d1   : > { %v964_v9 = vadd.f32 %v1379_v7, %v1306_v6  ;;  %v983_v14 = vmax.f32 %v953_v8, 0.0 }
 0x1d2   : > { %v955_v11 = vpop.f32.mrf.mxu1 }
 0x1d3   : > { %v956_v12 = vadd.f32 %v1306_v6, %v955_v11  ;;  %v986_v13 = vmax.f32 %v964_v9, 0.0 }
 0x1d5   : > { %v984_v15 = vmax.f32 %v956_v12, 0.0  ;;  %v992_v19 = vpack.c.bf16 %v986_v13, %v985_v16 }
 0x1d7   : > { %v991_v17 = vpack.c.bf16 %v984_v15, %v983_v14 }
 0x1d9   : > { %v1382_v18 = vpop.f32.mrf.mxu1  ;;  %1392 = vmatprep.mubr.msk.bf16.mxu0 %vm1034_vm4, %v991_v17 }
 0x1da   : > { %1393 = vmatmul.mubr.msk.bf16.vlgmr.msra.gmra.mxu0 %vm1034_vm4, %v992_v19  ;;  %v977_v24 = vadd.f32 %v1382_v18, %v1306_v6 }
 0x1db   : > { %v968_v20 = vpop.f32.mrf.mxu1 }
 0x1dc   : > { %v969_v22 = vadd.f32 %v1306_v6, %v968_v20  ;;  %v989_v30 = vmax.f32 %v977_v24, 0.0 }
 0x1dd   : > { %v1383_v21 = vpop.f32.mrf.mxu1 }
 0x1de   : > { %v980_v23 = vadd.f32 %v1383_v21, %v1306_v6  ;;  %v987_v28 = vmax.f32 %v969_v22, 0.0 }
 0x1df   : > { %v971_v25 = vpop.f32.mrf.mxu1 }
 0x1e0   : > { %v972_v26 = vadd.f32 %v1306_v6, %v971_v25  ;;  %v990_v27 = vmax.f32 %v980_v23, 0.0 }
 0x1e2   : > { %v988_v29 = vmax.f32 %v972_v26, 0.0  ;;  %v994_v32 = vpack.c.bf16 %v990_v27, %v989_v30 }
 0x1e4   : > { %v993_v31 = vpack.c.bf16 %v988_v29, %v987_v28 }
 0x1e6   : > { %1396 = vmatprep.mubr.msk.bf16.mxu1 %vm1034_vm4, %v993_v31 }
 0x1e7   : > { %1397 = vmatmul.mubr.msk.bf16.vlgmr.msra.gmra.mxu1 %vm1034_vm4, %v994_v32 }
 0x29a   : > { %v1394_v35 = vpop.f32.mrf.mxu0 }
 0x29b   : > { %v1090_v37 = vadd.f32 %v1394_v35, %v1312_v33 }
 0x29c   : > { %v1081_v39 = vpop.f32.mrf.mxu0 }
 0x29d   : > { %v1114_v40 = vmax.f32 %v1090_v37, 0.0  ;;  %v1082_v41 = vadd.f32 %v1312_v33, %v1081_v39 }
 0x29e   : > { %v1395_v43 = vpop.f32.mrf.mxu0 }
 0x29f   : > { %v1138_v44 = vadd.f32 %v1330_v38, %v1114_v40  ;;  %v1112_v45 = vmax.f32 %v1082_v41, 0.0  ;;  %v1093_v46 = vadd.f32 %v1395_v43, %v1312_v33 }
 0x2a0   : > { %v1084_v48 = vpop.f32.mrf.mxu0 }
 0x2a1   : > { %1146 = vst.msk [vmem:[%s1735_s15 + $0x10] sm:$0xff] %vm905_vm3, %v1138_v44  ;;  %v1136_v49 = vadd.f32 %v1326_v42, %v1112_v45  ;;  %v1115_v50 = vmax.f32 %v1093_v46, 0.0  ;;  %v1085_v51 = vadd.f32 %v1312_v33, %v1084_v48 }
 0x2a3   : > { %1144 = vst.msk [vmem:[%s1735_s15] sm:$0xff] %vm905_vm3, %v1136_v49  ;;  %v1139_v53 = vadd.f32 %v1331_v47, %v1115_v50  ;;  %v1113_v54 = vmax.f32 %v1085_v51, 0.0 }
 0x2a5   : > { %1147 = vst.msk [vmem:[%s1735_s15 + $0x18] sm:$0xff] %vm905_vm3, %v1139_v53  ;;  %v1137_v56 = vadd.f32 %v1327_v52, %v1113_v54 }
 0x2a7   : > { %v1398_v57 = vpop.f32.mrf.mxu1  ;;  %1145 = vst.msk [vmem:[%s1735_s15 + $0x8] sm:$0xff] %vm905_vm3, %v1137_v56 }
 0x2a8   : > { %v1106_v59 = vadd.f32 %v1398_v57, %v1312_v33 }
 0x2a9   : > { %v1097_v61 = vpop.f32.mrf.mxu1 }
 0x2aa   : > { %v1118_v62 = vmax.f32 %v1106_v59, 0.0  ;;  %v1098_v63 = vadd.f32 %v1312_v33, %v1097_v61 }
 0x2ab   : > { %v1399_v1 = vpop.f32.mrf.mxu1 }
 0x2ac   : > { %v1142_v2 = vadd.f32 %v1338_v60, %v1118_v62  ;;  %v1116_v3 = vmax.f32 %v1098_v63, 0.0  ;;  %v1109_v4 = vadd.f32 %v1399_v1, %v1312_v33 }
 0x2ad   : > { %v1100_v6 = vpop.f32.mrf.mxu1 }
 0x2ae   : > { %1150 = vst.msk [vmem:[%s1735_s15 + $0x30] sm:$0xff] %vm905_vm3, %v1142_v2  ;;  %v1140_v7 = vadd.f32 %v1334_v0, %v1116_v3  ;;  %v1119_v8 = vmax.f32 %v1109_v4, 0.0  ;;  %v1101_v9 = vadd.f32 %v1312_v33, %v1100_v6 }
 0x2b0   : > { %1148 = vst.msk [vmem:[%s1735_s15 + $0x20] sm:$0xff] %vm905_vm3, %v1140_v7  ;;  %v1143_v11 = vadd.f32 %v1339_v5, %v1119_v8  ;;  %v1117_v12 = vmax.f32 %v1101_v9, 0.0 }
 0x2b2   : > { %1151 = vst.msk [vmem:[%s1735_s15 + $0x38] sm:$0xff] %vm905_vm3, %v1143_v11  ;;  %v1141_v13 = vadd.f32 %v1335_v10, %v1117_v12 }
 0x2b4   : > { %1149 = vst.msk [vmem:[%s1735_s15 + $0x28] sm:$0xff] %vm905_vm3, %v1141_v13 }
 0x2b5 PF: > { %p15_p9 = scmp.ge.s32.totalorder %s1527_s9, 4   ;;  %s1774_s27 = smov %s1458_s28 }
 0x2b6   : > { %s1775_s28 = smov %s1536_s12  ;;  %s1776_s29 = smov %s1527_s9 }
 0x2b7   :  { %17 = sbr.rel (!%p15_p9) target bundleno = 2 (0x2), region = 138 }

</bundles_post_ra>
